<compile_context>
chip_gen: v6e
topology: v6e:2x2x1
jax: 0.10.0
libtpu: 0.0.40
codegen_flags: <defaults>
</compile_context>

<pallas_src>
import math
import functools

import jax
import jax.numpy as jnp
from jax.experimental import pallas as pl
from jax.experimental.pallas import tpu as pltpu


# ------------------------------ fused kernel ---------------------------------

def att_layer_kernel(x_ref, wqkv_ref, bq_ref, wout_ref, boe_ref,
                     w1_ref, b1_ref, w2_ref, o_ref, *, n_head):
    B, S, E = x_ref.shape
    H = n_head
    G = H * B                      # attention batch = heads x batch
    M = B * S

    x = x_ref[...]                                   # (B, S, E) f32
    x2 = x.reshape(M, E)                             # residual / FFN domain

    # ---- QKV projection: q/k/v AND heads folded into the einsum batch dim ----
    # wqkv_ref is (3*H*B, E, dh) bf16, index g = ((part*H + h)*B + b); the
    # 1/sqrt(dh) scale is pre-folded into the Q slabs.
    xb = jnp.broadcast_to(x.astype(jnp.bfloat16)[None], (3 * H, B, S, E))
    xb = xb.reshape(3 * G, S, E)                     # free leading-dim merge
    qkv = jnp.einsum('gse,ged->gsd', xb, wqkv_ref[...],
                     preferred_element_type=jnp.float32)      # (3G, S, dh) f32

    q = qkv[:G] + bq_ref[...]        # Q bias (pre-scaled); K/V biases folded away
    k = qkv[G:2 * G]
    v = qkv[2 * G:]

    # ---- scaled-dot-product attention, batch = (head, batch); f32 softmax ----
    s = jnp.einsum('gqd,gkd->gqk', q, k, preferred_element_type=jnp.float32)
    s = s - jnp.max(s, axis=-1, keepdims=True)
    p = jnp.exp(s)
    p = p * pl.reciprocal(jnp.sum(p, axis=-1, keepdims=True), approx=True)
    o = jnp.einsum('gqk,gkd->gqd', p, v,
                   preferred_element_type=jnp.float32)        # (G, S, dh)

    # ---- output projection: per-head slab matmul, heads merged by a sum ------
    proj = jnp.einsum('gsd,gde->gse', o.astype(jnp.bfloat16), wout_ref[...],
                      preferred_element_type=jnp.float32)     # (G, S, E)
    attn = jnp.sum(proj.reshape(H, B, S, E), axis=0).reshape(M, E)

    h1 = x2 + attn + boe_ref[0:1, :]                 # residual 1 (+ effective out bias)

    # ---- feed-forward + residual 2 (bf16 matmul operands, f32 accumulation) ---
    f = jnp.dot(h1.astype(jnp.bfloat16), w1_ref[...],
                preferred_element_type=jnp.float32) + b1_ref[...]
    f = jnp.maximum(f, 0.0)
    y = jnp.dot(f.astype(jnp.bfloat16), w2_ref[...],
                preferred_element_type=jnp.float32)

    o_ref[...] = (h1 + y + boe_ref[1:2, :]).reshape(B, S, E).astype(o_ref.dtype)


def att_layer_forward(x, kparams, n_head):
    """x: (B, S, E) float32 -> (B, S, E) float32, one fused pallas_call."""
    B, S, E = x.shape
    kern = functools.partial(att_layer_kernel, n_head=n_head)
    vmem = pl.BlockSpec(memory_space=pltpu.MemorySpace.VMEM)  # whole array in VMEM
    # Note: at large B*S add a row-tiled grid (dimension_semantics=("parallel",))
    # with constant weight index_maps, and a flash-style KV loop for long S; both
    # are no-ops at the tiny sizes used here.
    return pl.pallas_call(
        kern,
        out_shape=jax.ShapeDtypeStruct((B, S, E), jnp.float32),
        in_specs=[vmem] * 8,
        out_specs=vmem,
    )(x, kparams["w_qkv"], kparams["b_q"], kparams["w_out"], kparams["b_oe"],
      kparams["w1"], kparams["b1"], kparams["w2"])


# -------------------- one-time parameter packing for the kernel ---------------

def pack_params_for_kernel(params, n_head, batch):
    """Transform PyTorch-layout params into kernel operands (runs once).

    Folds (all exact, validated against the f32 reference):
      * 1/sqrt(dh) attention scale into the Q projection weight/bias,
      * drops the K projection bias (softmax is invariant to per-row shifts),
      * folds the V projection bias into the out-projection bias
        (softmax rows sum to 1 -> it adds exactly b_v @ W_out to every row),
      * pre-splits per-head slabs and replicates them over the batch so the
        kernel never slices dh-wide lane chunks,
      * casts matmul weights to bf16 (accumulation stays f32 in-kernel).
    """
    E, F = params["w1"].shape
    H, B = n_head, batch
    dh = E // H
    scale = 1.0 / math.sqrt(dh)
    bf16, f32 = jnp.bfloat16, jnp.float32

    # (E, 3E) -> (3, H, E, dh) per-(part, head) slabs; scale folded into Q.
    w_in = params["w_in"].reshape(E, 3, H, dh).transpose(1, 2, 0, 3)
    w_in = w_in.at[0].multiply(scale)
    w_qkv = jnp.broadcast_to(w_in[:, :, None], (3, H, B, E, dh))
    w_qkv = w_qkv.reshape(3 * H * B, E, dh).astype(bf16)

    b_q = (params["b_in"][:E] * scale).reshape(H, 1, dh)
    b_q = jnp.broadcast_to(b_q[:, None], (H, B, 1, dh)).reshape(H * B, 1, dh).astype(f32)

    w_out_h = params["w_out"].reshape(H, dh, E)
    w_out_h = jnp.broadcast_to(w_out_h[:, None], (H, B, dh, E))
    w_out_h = w_out_h.reshape(H * B, dh, E).astype(bf16)

    b_out_eff = params["b_out"] + params["b_in"][2 * E:] @ params["w_out"]
    b_oe = jnp.stack([b_out_eff, params["b2"]]).astype(f32)            # (2, E)

    return dict(
        w_qkv=w_qkv, b_q=b_q, w_out=w_out_h, b_oe=b_oe,
        w1=params["w1"].astype(bf16),
        b1=params["b1"].reshape(1, F).astype(f32),
        w2=params["w2"].astype(bf16),
    )


# --------------------------- pure-JAX reference -------------------------------

def att_layer_reference(x, params, n_head):
    B, S, E = x.shape
    dh = E // n_head
    qkv = x @ params["w_in"] + params["b_in"]                       # (B, S, 3E)
    q, k, v = jnp.split(qkv, 3, axis=-1)
    def split_heads(t):
        return t.reshape(B, S, n_head, dh).transpose(0, 2, 1, 3)    # (B, H, S, dh)
    q, k, v = map(split_heads, (q, k, v))
    s = jnp.einsum('bhqd,bhkd->bhqk', q, k) / math.sqrt(dh)
    p = jax.nn.softmax(s, axis=-1)
    o = jnp.einsum('bhqk,bhkd->bhqd', p, v).transpose(0, 2, 1, 3).reshape(B, S, E)
    h1 = x + (o @ params["w_out"] + params["b_out"])
    f = jnp.maximum(h1 @ params["w1"] + params["b1"], 0.0)
    return h1 + (f @ params["w2"] + params["b2"])


# ------------------------------- parameters -----------------------------------

def init_att_layer_params(key, embed_dim, feed_forward_hidden=512):
    E, F = embed_dim, feed_forward_hidden
    ks = jax.random.split(key, 8)
    u = lambda k, shape, b: jax.random.uniform(k, shape, jnp.float32, -b, b)
    return {
        # nn.MultiheadAttention: in_proj_weight.T (E, 3E) with q/k/v column blocks,
        # out_proj.weight.T (E, E).  Dropout is 0 (PyTorch default) -> omitted.
        "w_in":  u(ks[0], (E, 3 * E), 1.0 / math.sqrt(E)),
        "b_in":  u(ks[1], (3 * E,),   1.0 / math.sqrt(E)),
        "w_out": u(ks[2], (E, E),     1.0 / math.sqrt(E)),
        "b_out": u(ks[3], (E,),       1.0 / math.sqrt(E)),
        # embed = Linear(E, F) -> ReLU -> Linear(F, E)
        "w1":    u(ks[4], (E, F),     1.0 / math.sqrt(E)),
        "b1":    u(ks[5], (F,),       1.0 / math.sqrt(E)),
        "w2":    u(ks[6], (F, E),     1.0 / math.sqrt(F)),
        "b2":    u(ks[7], (E,),       1.0 / math.sqrt(F)),
    }


# ----------------------------------- main --------------------------------------

if __name__ == "__main__":
    B, S, E, N_HEAD, FFN = 2, 8, 32, 8, 512   # feed_forward_hidden=512 (module default)

    key = jax.random.PRNGKey(0)
    pkey, xkey = jax.random.split(key)
    params = init_att_layer_params(pkey, E, FFN)
    x = jax.random.normal(xkey, (B, S, E), jnp.float32)

    kparams = pack_params_for_kernel(params, N_HEAD, B)

    out = att_layer_forward(x, kparams, N_HEAD)
    jax.block_until_ready(out)

    ref = att_layer_reference(x, params, N_HEAD)
    assert out.shape == (B, S, E)
    assert bool(jnp.all(jnp.isfinite(out)))
    # tolerance covers bf16 matmul operands + EUP approx reciprocal vs f32 reference
    err = float(jnp.max(jnp.abs(out - ref)))
    assert bool(jnp.allclose(out, ref, rtol=5e-2, atol=5e-2)), err

    print("KERNEL_OK")
</pallas_src>

<mosaic_0001>
module attributes {stable_mosaic.version = 11 : i64} {
  func.func @att_layer_kernel(%arg0: memref<2x8x32xf32, #tpu.memory_space<vmem>>, %arg1: memref<48x32x4xbf16, #tpu.memory_space<vmem>>, %arg2: memref<16x1x4xf32, #tpu.memory_space<vmem>>, %arg3: memref<16x4x32xbf16, #tpu.memory_space<vmem>>, %arg4: memref<2x32xf32, #tpu.memory_space<vmem>>, %arg5: memref<32x512xbf16, #tpu.memory_space<vmem>>, %arg6: memref<1x512xf32, #tpu.memory_space<vmem>>, %arg7: memref<512x32xbf16, #tpu.memory_space<vmem>>, %arg8: memref<2x8x32xf32, #tpu.memory_space<vmem>>) attributes {dimension_semantics = [], scalar_prefetch = 0 : i64, scratch_operands = 0 : i64, tpu.core_type = #tpu.core_type<tc>} {
    %c0 = arith.constant 0 : index
    %c0_0 = arith.constant 0 : index
    %c0_1 = arith.constant 0 : index
    %0 = vector.load %arg0[%c0, %c0_0, %c0_1] : memref<2x8x32xf32, #tpu.memory_space<vmem>>, vector<2x8x32xf32>
    %1 = vector.shape_cast %0 : vector<2x8x32xf32> to vector<16x32xf32>
    %2 = arith.truncf %0 : vector<2x8x32xf32> to vector<2x8x32xbf16>
    %3 = vector.shape_cast %2 : vector<2x8x32xbf16> to vector<1x2x8x32xbf16>
    %4 = vector.shape_cast %3 : vector<1x2x8x32xbf16> to vector<1x2x8x32xbf16>
    %5 = vector.broadcast %4 : vector<1x2x8x32xbf16> to vector<24x2x8x32xbf16>
    %6 = vector.shape_cast %5 : vector<24x2x8x32xbf16> to vector<48x8x32xbf16>
    %c0_2 = arith.constant 0 : index
    %c0_3 = arith.constant 0 : index
    %c0_4 = arith.constant 0 : index
    %7 = vector.load %arg1[%c0_2, %c0_3, %c0_4] : memref<48x32x4xbf16, #tpu.memory_space<vmem>>, vector<48x32x4xbf16>
    "tpu.trace_start"() <{level = 10 : i32, message = "gse,ged->gsd"}> : () -> ()
    %cst = arith.constant dense<0.000000e+00> : vector<48x8x4xf32>
    %8 = tpu.matmul %6, %7, %cst {dimension_numbers = #tpu.dot_dimension_numbers<[2], [1], [1], [2], [0, 0, 0, 1, 1, 2], [0], [0]>} : vector<48x8x32xbf16>, vector<48x32x4xbf16>, vector<48x8x4xf32> -> vector<48x8x4xf32>
    "tpu.trace_stop"() : () -> ()
    %9 = vector.extract_strided_slice %8 {offsets = [0, 0, 0], sizes = [16, 8, 4], strides = [1, 1, 1]} : vector<48x8x4xf32> to vector<16x8x4xf32>
    %c0_5 = arith.constant 0 : index
    %c0_6 = arith.constant 0 : index
    %c0_7 = arith.constant 0 : index
    %10 = vector.load %arg2[%c0_5, %c0_6, %c0_7] : memref<16x1x4xf32, #tpu.memory_space<vmem>>, vector<16x1x4xf32>
    %11 = vector.broadcast %10 : vector<16x1x4xf32> to vector<16x8x4xf32>
    %12 = arith.addf %9, %11 : vector<16x8x4xf32>
    %13 = vector.extract_strided_slice %8 {offsets = [16, 0, 0], sizes = [16, 8, 4], strides = [1, 1, 1]} : vector<48x8x4xf32> to vector<16x8x4xf32>
    %14 = vector.extract_strided_slice %8 {offsets = [32, 0, 0], sizes = [16, 8, 4], strides = [1, 1, 1]} : vector<48x8x4xf32> to vector<16x8x4xf32>
    "tpu.trace_start"() <{level = 10 : i32, message = "gqd,gkd->gqk"}> : () -> ()
    %cst_8 = arith.constant dense<0.000000e+00> : vector<16x8x8xf32>
    %15 = tpu.matmul %12, %13, %cst_8 {dimension_numbers = #tpu.dot_dimension_numbers<[2], [2], [1], [1], [0, 0, 0, 1, 1, 1], [0], [0]>} : vector<16x8x4xf32>, vector<16x8x4xf32>, vector<16x8x8xf32> -> vector<16x8x8xf32>
    "tpu.trace_stop"() : () -> ()
    %cst_9 = arith.constant dense<0xFF800000> : vector<16x8xf32>
    %16 = vector.multi_reduction <maximumf>, %15, %cst_9 [2] : vector<16x8x8xf32> to vector<16x8xf32>
    %17 = vector.shape_cast %16 : vector<16x8xf32> to vector<16x8x1xf32>
    %18 = vector.broadcast %17 : vector<16x8x1xf32> to vector<16x8x8xf32>
    %19 = arith.subf %15, %18 : vector<16x8x8xf32>
    %20 = math.exp %19 : vector<16x8x8xf32>
    %cst_10 = arith.constant dense<0.000000e+00> : vector<16x8xf32>
    %21 = vector.multi_reduction <add>, %20, %cst_10 [2] : vector<16x8x8xf32> to vector<16x8xf32>
    %22 = vector.shape_cast %21 : vector<16x8xf32> to vector<16x8x1xf32>
    %23 = tpu.reciprocal %22 {approx = true} : vector<16x8x1xf32> -> vector<16x8x1xf32>
    %24 = vector.broadcast %23 : vector<16x8x1xf32> to vector<16x8x8xf32>
    %25 = arith.mulf %20, %24 : vector<16x8x8xf32>
    "tpu.trace_start"() <{level = 10 : i32, message = "gqk,gkd->gqd"}> : () -> ()
    %cst_11 = arith.constant dense<0.000000e+00> : vector<16x8x4xf32>
    %26 = tpu.matmul %25, %14, %cst_11 {dimension_numbers = #tpu.dot_dimension_numbers<[2], [1], [1], [2], [0, 0, 0, 1, 1, 2], [0], [0]>} : vector<16x8x8xf32>, vector<16x8x4xf32>, vector<16x8x4xf32> -> vector<16x8x4xf32>
    "tpu.trace_stop"() : () -> ()
    %27 = arith.truncf %26 : vector<16x8x4xf32> to vector<16x8x4xbf16>
    %c0_12 = arith.constant 0 : index
    %c0_13 = arith.constant 0 : index
    %c0_14 = arith.constant 0 : index
    %28 = vector.load %arg3[%c0_12, %c0_13, %c0_14] : memref<16x4x32xbf16, #tpu.memory_space<vmem>>, vector<16x4x32xbf16>
    "tpu.trace_start"() <{level = 10 : i32, message = "gsd,gde->gse"}> : () -> ()
    %cst_15 = arith.constant dense<0.000000e+00> : vector<16x8x32xf32>
    %29 = tpu.matmul %27, %28, %cst_15 {dimension_numbers = #tpu.dot_dimension_numbers<[2], [1], [1], [2], [0, 0, 0, 1, 1, 2], [0], [0]>} : vector<16x8x4xbf16>, vector<16x4x32xbf16>, vector<16x8x32xf32> -> vector<16x8x32xf32>
    "tpu.trace_stop"() : () -> ()
    %30 = vector.shape_cast %29 : vector<16x8x32xf32> to vector<8x2x8x32xf32>
    %cst_16 = arith.constant dense<0.000000e+00> : vector<2x8x32xf32>
    %31 = vector.multi_reduction <add>, %30, %cst_16 [0] : vector<8x2x8x32xf32> to vector<2x8x32xf32>
    %32 = vector.shape_cast %31 : vector<2x8x32xf32> to vector<16x32xf32>
    %33 = arith.addf %1, %32 : vector<16x32xf32>
    %c0_17 = arith.constant 0 : index
    %c0_18 = arith.constant 0 : index
    %34 = vector.load %arg4[%c0_17, %c0_18] : memref<2x32xf32, #tpu.memory_space<vmem>>, vector<1x32xf32>
    %35 = vector.broadcast %34 : vector<1x32xf32> to vector<16x32xf32>
    %36 = arith.addf %33, %35 : vector<16x32xf32>
    %37 = arith.truncf %36 : vector<16x32xf32> to vector<16x32xbf16>
    %c0_19 = arith.constant 0 : index
    %c0_20 = arith.constant 0 : index
    %38 = vector.load %arg5[%c0_19, %c0_20] : memref<32x512xbf16, #tpu.memory_space<vmem>>, vector<32x512xbf16>
    %cst_21 = arith.constant dense<0.000000e+00> : vector<16x512xf32>
    %39 = tpu.matmul %37, %38, %cst_21 {dimension_numbers = #tpu.dot_dimension_numbers<[1], [0], [0], [1], [0, 0, 1, 1], [], []>} : vector<16x32xbf16>, vector<32x512xbf16>, vector<16x512xf32> -> vector<16x512xf32>
    %c0_22 = arith.constant 0 : index
    %c0_23 = arith.constant 0 : index
    %40 = vector.load %arg6[%c0_22, %c0_23] : memref<1x512xf32, #tpu.memory_space<vmem>>, vector<1x512xf32>
    %41 = vector.broadcast %40 : vector<1x512xf32> to vector<16x512xf32>
    %42 = arith.addf %39, %41 : vector<16x512xf32>
    %cst_24 = arith.constant 0.000000e+00 : f32
    %43 = vector.broadcast %cst_24 : f32 to vector<16x512xf32>
    %44 = arith.maximumf %42, %43 : vector<16x512xf32>
    %45 = arith.truncf %44 : vector<16x512xf32> to vector<16x512xbf16>
    %c0_25 = arith.constant 0 : index
    %c0_26 = arith.constant 0 : index
    %46 = vector.load %arg7[%c0_25, %c0_26] : memref<512x32xbf16, #tpu.memory_space<vmem>>, vector<512x32xbf16>
    %cst_27 = arith.constant dense<0.000000e+00> : vector<16x32xf32>
    %47 = tpu.matmul %45, %46, %cst_27 {dimension_numbers = #tpu.dot_dimension_numbers<[1], [0], [0], [1], [0, 0, 1, 1], [], []>} : vector<16x512xbf16>, vector<512x32xbf16>, vector<16x32xf32> -> vector<16x32xf32>
    %48 = arith.addf %36, %47 : vector<16x32xf32>
    %c1 = arith.constant 1 : index
    %c0_28 = arith.constant 0 : index
    %49 = vector.load %arg4[%c1, %c0_28] : memref<2x32xf32, #tpu.memory_space<vmem>>, vector<1x32xf32>
    %50 = vector.broadcast %49 : vector<1x32xf32> to vector<16x32xf32>
    %51 = arith.addf %48, %50 : vector<16x32xf32>
    %52 = vector.shape_cast %51 : vector<16x32xf32> to vector<2x8x32xf32>
    %c0_29 = arith.constant 0 : index
    %c0_30 = arith.constant 0 : index
    %c0_31 = arith.constant 0 : index
    %53 = vector.load %arg8[%c0_29, %c0_30, %c0_31] : memref<2x8x32xf32, #tpu.memory_space<vmem>>, vector<2x8x32xf32>
    tpu.vector_store %arg8[%c0_29, %c0_30, %c0_31], %52 {strides = array<i32>} : memref<2x8x32xf32, #tpu.memory_space<vmem>>, vector<2x8x32xf32>,
    return
  }
}

</mosaic_0001>

<bundles_post_ra>
// kernel: tpu_custom_call.1
= control target key start
LH: loop header
LB: loop body
LE: loop exit
PB: predicated region body
PF: predicated region fallthrough
CT: control target
= control target key end

     0   :  { %v8191_v1 = vmov 0.0   ;;  %vm8192_vm0 = vmmov 0   ;;  %vm239_vm1 = vcmask 261120   ;;  %s9564_s0 = inlined_call_operand.vmem [shape: f32[2,8,32], index: 0, kind: input, shape index: {}]   ;;  %s9565_s1 = inlined_call_operand.vmem [shape: bf16[48,32,4], index: 1, kind: input, shape index: {}]   ;;  %s9566_s2 = inlined_call_operand.vmem [shape: f32[16,1,4], index: 2, kind: input, shape index: {}]   ;;  %s9567_s3 = inlined_call_operand.vmem [shape: bf16[16,4,32], index: 3, kind: input, shape index: {}]   ;;  %s9568_s4 = inlined_call_operand.vmem [shape: f32[2,32], index: 4, kind: input, shape index: {}]   ;;  %s9569_s5 = inlined_call_operand.vmem [shape: bf16[32,512], index: 5, kind: input, shape index: {}]   ;;  %s9570_s6 = inlined_call_operand.vmem [shape: f32[1,512], index: 6, kind: input, shape index: {}]   ;;  %s9571_s7 = inlined_call_operand.vmem [shape: bf16[512,32], index: 7, kind: input, shape index: {}]   ;;  %s9572_s8 = inlined_call_operand.hbm [shape: f32[2,8,32], index: 8, kind: output, shape index: {}]  }
   0x1   :  { %v7963_v0 = vld [vmem:[%s9565_s1 + $0x8] sm:$0xff]   ;;  %7317 = vmatprep.subr.bf16.mxu0 %v8191_v1  ;;  %7325 = vmatprep.subr.bf16.mxu1 %v8191_v1  ;;  %v7964_v2 = vld [vmem:[%s9565_s1 + $0x18] sm:$0xff]   ;;  %v7965_v3 = vld [vmem:[%s9565_s1] sm:$0xff]  }
   0x2   :  { %7318 = vmatpush3.bf16.msra.mxu0 %v7963_v0  ;;  %7321 = vmatprep.mubr.msk.bf16.mxu0 %vm8192_vm0, %v8191_v1  ;;  %v7966_v4 = vld [vmem:[%s9565_s1 + $0x10] sm:$0xff]   ;;  %v31_v5 = vld [vmem:[%s9564_s0] sm:$0xff]  ;;  %v32_v6 = vld [vmem:[%s9564_s0 + $0x8] sm:$0xff] }
   0x3   :  { %7326 = vmatpush3.bf16.msra.mxu1 %v7964_v2  ;;  %7319 = vmatprep.subr.bf16.mxu0 %v8191_v1  ;;  %v8268_v7 = vpack.c.bf16 %v31_v5, %v31_v5  ;;  %v8270_v8 = vpack.c.bf16 %v32_v6, %v32_v6  ;;  %v7967_v9 = vld [vmem:[%s9565_s1 + $0x28] sm:$0xff]   ;;  %v7968_v10 = vld [vmem:[%s9565_s1 + $0x38] sm:$0xff]   ;;  %v7969_v11 = vld [vmem:[%s9565_s1 + $0x20] sm:$0xff]  }
   0x4   :  { %7327 = vmatprep.subr.bf16.mxu1 %v8191_v1  ;;  %7329 = vmatprep.mubr.msk.bf16.mxu1 %vm8192_vm0, %v8191_v1  ;;  %v7970_v12 = vld [vmem:[%s9565_s1 + $0x30] sm:$0xff]   ;;  %v7971_v13 = vld [vmem:[%s9565_s1 + $0x48] sm:$0xff]   ;;  %v7972_v14 = vld [vmem:[%s9565_s1 + $0x58] sm:$0xff]  }
   0x5   :  { %v7973_v15 = vld [vmem:[%s9565_s1 + $0x40] sm:$0xff]   ;;  %v7974_v16 = vld [vmem:[%s9565_s1 + $0x50] sm:$0xff]   ;;  %v7975_v17 = vld [vmem:[%s9565_s1 + $0x68] sm:$0xff]  }
   0x6   :  { %7320 = vmatpush3.bf16.msra.mxu0 %v7965_v3  ;;  %v7976_v18 = vld [vmem:[%s9565_s1 + $0x78] sm:$0xff]   ;;  %v7977_v19 = vld [vmem:[%s9565_s1 + $0x60] sm:$0xff]   ;;  %v7978_v20 = vld [vmem:[%s9565_s1 + $0x70] sm:$0xff]  }
   0x7   :  { %7328 = vmatpush3.bf16.msra.mxu1 %v7966_v4  ;;  %7333 = vmatprep.subr.bf16.mxu0 %v8191_v1  ;;  %v7979_v21 = vld [vmem:[%s9565_s1 + $0x88] sm:$0xff]   ;;  %v7980_v22 = vld [vmem:[%s9565_s1 + $0x98] sm:$0xff]   ;;  %v7981_v23 = vld [vmem:[%s9565_s1 + $0x80] sm:$0xff]  }
   0x8   :  { %7341 = vmatprep.subr.bf16.mxu1 %v8191_v1  ;;  %v7982_v24 = vld [vmem:[%s9565_s1 + $0x90] sm:$0xff]   ;;  %v7983_v25 = vld [vmem:[%s9565_s1 + $0xa8] sm:$0xff]   ;;  %v7984_v26 = vld [vmem:[%s9565_s1 + $0xb8] sm:$0xff]  }
   0x9   :  { %7322 = vmatmul.mubr.msk.bf16.vlgmr.msra.gmra.mxu0 %vm239_vm1, %v8268_v7  ;;  %v7985_v27 = vld [vmem:[%s9565_s1 + $0xa0] sm:$0xff]   ;;  %v7986_v28 = vld [vmem:[%s9565_s1 + $0xb0] sm:$0xff]   ;;  %v7987_v29 = vld [vmem:[%s9565_s1 + $0xc8] sm:$0xff]  }
   0xa   :  { %7330 = vmatmul.mubr.msk.bf16.vlgmr.msra.gmra.mxu1 %vm239_vm1, %v8270_v8  ;;  %7334 = vmatpush3.bf16.msra.mxu0 %v7967_v9  ;;  %v7988_v30 = vld [vmem:[%s9565_s1 + $0xd8] sm:$0xff]   ;;  %v7989_v31 = vld [vmem:[%s9565_s1 + $0xc0] sm:$0xff]   ;;  %v7990_v32 = vld [vmem:[%s9565_s1 + $0xd0] sm:$0xff]  }
   0xb   :  { %7342 = vmatpush3.bf16.msra.mxu1 %v7968_v10  ;;  %7335 = vmatprep.subr.bf16.mxu0 %v8191_v1  ;;  %v7991_v33 = vld [vmem:[%s9565_s1 + $0xe8] sm:$0xff]   ;;  %v7992_v34 = vld [vmem:[%s9565_s1 + $0xf8] sm:$0xff]   ;;  %v7993_v35 = vld [vmem:[%s9565_s1 + $0xe0] sm:$0xff]  }
   0xc   :  { %7343 = vmatprep.subr.bf16.mxu1 %v8191_v1  ;;  %7337 = vmatprep.mubr.msk.bf16.mxu0 %vm8192_vm0, %v8191_v1  ;;  %v7994_v36 = vld [vmem:[%s9565_s1 + $0xf0] sm:$0xff]   ;;  %v7995_v37 = vld [vmem:[%s9565_s1 + $0x108] sm:$0xff]   ;;  %v7996_v38 = vld [vmem:[%s9565_s1 + $0x118] sm:$0xff]  }
   0xd   :  { %7345 = vmatprep.mubr.msk.bf16.mxu1 %vm8192_vm0, %v8191_v1  ;;  %v7997_v39 = vld [vmem:[%s9565_s1 + $0x100] sm:$0xff]   ;;  %v7998_v40 = vld [vmem:[%s9565_s1 + $0x110] sm:$0xff]   ;;  %v7999_v41 = vld [vmem:[%s9565_s1 + $0x128] sm:$0xff]  }
   0xe   :  { %7336 = vmatpush3.bf16.msra.mxu0 %v7969_v11  ;;  %v8000_v42 = vld [vmem:[%s9565_s1 + $0x138] sm:$0xff]   ;;  %v8001_v43 = vld [vmem:[%s9565_s1 + $0x120] sm:$0xff]   ;;  %v8002_v44 = vld [vmem:[%s9565_s1 + $0x130] sm:$0xff]  }
   0xf   :  { %7344 = vmatpush3.bf16.msra.mxu1 %v7970_v12  ;;  %7349 = vmatprep.subr.bf16.mxu0 %v8191_v1  ;;  %v8003_v45 = vld [vmem:[%s9565_s1 + $0x148] sm:$0xff]   ;;  %v8004_v46 = vld [vmem:[%s9565_s1 + $0x158] sm:$0xff]   ;;  %v8005_v47 = vld [vmem:[%s9565_s1 + $0x140] sm:$0xff]  }
  0x10   :  { %7357 = vmatprep.subr.bf16.mxu1 %v8191_v1  ;;  %v8006_v48 = vld [vmem:[%s9565_s1 + $0x150] sm:$0xff]   ;;  %v8007_v49 = vld [vmem:[%s9565_s1 + $0x168] sm:$0xff]   ;;  %v8008_v50 = vld [vmem:[%s9565_s1 + $0x178] sm:$0xff]  }
  0x11   :  { %7338 = vmatmul.mubr.msk.bf16.vlgmr.msra.gmra.mxu0 %vm239_vm1, %v8268_v7  ;;  %v8009_v51 = vld [vmem:[%s9565_s1 + $0x160] sm:$0xff]   ;;  %v8010_v52 = vld [vmem:[%s9565_s1 + $0x170] sm:$0xff]   ;;  %v8011_v53 = vld [vmem:[%s9565_s1 + $0x188] sm:$0xff]  }
  0x12   :  { %7346 = vmatmul.mubr.msk.bf16.vlgmr.msra.gmra.mxu1 %vm239_vm1, %v8270_v8  ;;  %7350 = vmatpush3.bf16.msra.mxu0 %v7971_v13  ;;  %v8012_v54 = vld [vmem:[%s9565_s1 + $0x198] sm:$0xff]   ;;  %v8013_v55 = vld [vmem:[%s9565_s1 + $0x180] sm:$0xff]   ;;  %v8014_v56 = vld [vmem:[%s9565_s1 + $0x190] sm:$0xff]  }
  0x13   :  { %7358 = vmatpush3.bf16.msra.mxu1 %v7972_v14  ;;  %7351 = vmatprep.subr.bf16.mxu0 %v8191_v1  ;;  %v8015_v57 = vld [vmem:[%s9565_s1 + $0x1a8] sm:$0xff]   ;;  %v8016_v58 = vld [vmem:[%s9565_s1 + $0x1b8] sm:$0xff]   ;;  %v8017_v59 = vld [vmem:[%s9565_s1 + $0x1a0] sm:$0xff]  }
  0x14   :  { %7359 = vmatprep.subr.bf16.mxu1 %v8191_v1  ;;  %7353 = vmatprep.mubr.msk.bf16.mxu0 %vm8192_vm0, %v8191_v1  ;;  %v8018_v60 = vld [vmem:[%s9565_s1 + $0x1b0] sm:$0xff]   ;;  %v8019_v61 = vld [vmem:[%s9565_s1 + $0x1c8] sm:$0xff]   ;;  %v8020_v62 = vld [vmem:[%s9565_s1 + $0x1d8] sm:$0xff]  }
  0x15   :  { %7361 = vmatprep.mubr.msk.bf16.mxu1 %vm8192_vm0, %v8191_v1  ;;  %v8021_v63 = vld [vmem:[%s9565_s1 + $0x1c0] sm:$0xff]   ;;  %v8022_v0 = vld [vmem:[%s9565_s1 + $0x1d0] sm:$0xff]   ;;  %v8023_v2 = vld [vmem:[%s9565_s1 + $0x1e8] sm:$0xff]  }
  0x16   :  { %7352 = vmatpush3.bf16.msra.mxu0 %v7973_v15  ;;  %v8024_v3 = vld [vmem:[%s9565_s1 + $0x1f8] sm:$0xff]   ;;  %v8025_v4 = vld [vmem:[%s9565_s1 + $0x1e0] sm:$0xff]   ;;  %v8026_v5 = vld [vmem:[%s9565_s1 + $0x1f0] sm:$0xff]  }
  0x17   :  { %7360 = vmatpush3.bf16.msra.mxu1 %v7974_v16  ;;  %7365 = vmatprep.subr.bf16.mxu0 %v8191_v1 }
  0x18   :  { %7373 = vmatprep.subr.bf16.mxu1 %v8191_v1 }
  0x19   :  { %7354 = vmatmul.mubr.msk.bf16.vlgmr.msra.gmra.mxu0 %vm239_vm1, %v8268_v7 }
  0x1a   :  { %7362 = vmatmul.mubr.msk.bf16.vlgmr.msra.gmra.mxu1 %vm239_vm1, %v8270_v8  ;;  %7366 = vmatpush3.bf16.msra.mxu0 %v7975_v17 }
  0x1b   :  { %7374 = vmatpush3.bf16.msra.mxu1 %v7976_v18  ;;  %7367 = vmatprep.subr.bf16.mxu0 %v8191_v1 }
  0x1c   :  { %7375 = vmatprep.subr.bf16.mxu1 %v8191_v1  ;;  %7369 = vmatprep.mubr.msk.bf16.mxu0 %vm8192_vm0, %v8191_v1 }
  0x1d   :  { %7377 = vmatprep.mubr.msk.bf16.mxu1 %vm8192_vm0, %v8191_v1 }
  0x1e   :  { %7368 = vmatpush3.bf16.msra.mxu0 %v7977_v19 }
  0x1f   :  { %7376 = vmatpush3.bf16.msra.mxu1 %v7978_v20  ;;  %7381 = vmatprep.subr.bf16.mxu0 %v8191_v1 }
  0x20   :  { %7389 = vmatprep.subr.bf16.mxu1 %v8191_v1 }
  0x21   :  { %7370 = vmatmul.mubr.msk.bf16.vlgmr.msra.gmra.mxu0 %vm239_vm1, %v8268_v7 }
  0x22   :  { %7378 = vmatmul.mubr.msk.bf16.vlgmr.msra.gmra.mxu1 %vm239_vm1, %v8270_v8  ;;  %7382 = vmatpush3.bf16.msra.mxu0 %v7979_v21 }
  0x23   :  { %7390 = vmatpush3.bf16.msra.mxu1 %v7980_v22  ;;  %7383 = vmatprep.subr.bf16.mxu0 %v8191_v1 }
  0x24   :  { %7391 = vmatprep.subr.bf16.mxu1 %v8191_v1  ;;  %7385 = vmatprep.mubr.msk.bf16.mxu0 %vm8192_vm0, %v8191_v1 }
  0x25   :  { %7393 = vmatprep.mubr.msk.bf16.mxu1 %vm8192_vm0, %v8191_v1 }
  0x26   :  { %7384 = vmatpush3.bf16.msra.mxu0 %v7981_v23 }
  0x27   :  { %7392 = vmatpush3.bf16.msra.mxu1 %v7982_v24  ;;  %7397 = vmatprep.subr.bf16.mxu0 %v8191_v1 }
  0x28   :  { %7405 = vmatprep.subr.bf16.mxu1 %v8191_v1 }
  0x29   :  { %7386 = vmatmul.mubr.msk.bf16.vlgmr.msra.gmra.mxu0 %vm239_vm1, %v8268_v7 }
  0x2a   :  { %7394 = vmatmul.mubr.msk.bf16.vlgmr.msra.gmra.mxu1 %vm239_vm1, %v8270_v8  ;;  %7398 = vmatpush3.bf16.msra.mxu0 %v7983_v25 }
  0x2b   :  { %7406 = vmatpush3.bf16.msra.mxu1 %v7984_v26  ;;  %7399 = vmatprep.subr.bf16.mxu0 %v8191_v1 }
  0x2c   :  { %7407 = vmatprep.subr.bf16.mxu1 %v8191_v1  ;;  %7401 = vmatprep.mubr.msk.bf16.mxu0 %vm8192_vm0, %v8191_v1 }
  0x2d   :  { %7409 = vmatprep.mubr.msk.bf16.mxu1 %vm8192_vm0, %v8191_v1 }
  0x2e   :  { %7400 = vmatpush3.bf16.msra.mxu0 %v7985_v27 }
  0x2f   :  { %7408 = vmatpush3.bf16.msra.mxu1 %v7986_v28  ;;  %7413 = vmatprep.subr.bf16.mxu0 %v8191_v1 }
  0x30   :  { %7421 = vmatprep.subr.bf16.mxu1 %v8191_v1 }
  0x31   :  { %7402 = vmatmul.mubr.msk.bf16.vlgmr.msra.gmra.mxu0 %vm239_vm1, %v8268_v7 }
  0x32   :  { %7410 = vmatmul.mubr.msk.bf16.vlgmr.msra.gmra.mxu1 %vm239_vm1, %v8270_v8  ;;  %7414 = vmatpush3.bf16.msra.mxu0 %v7987_v29 }
  0x33   :  { %7422 = vmatpush3.bf16.msra.mxu1 %v7988_v30  ;;  %7415 = vmatprep.subr.bf16.mxu0 %v8191_v1 }
  0x34   :  { %7423 = vmatprep.subr.bf16.mxu1 %v8191_v1  ;;  %7417 = vmatprep.mubr.msk.bf16.mxu0 %vm8192_vm0, %v8191_v1 }
  0x35   :  { %7425 = vmatprep.mubr.msk.bf16.mxu1 %vm8192_vm0, %v8191_v1 }
  0x36   :  { %7416 = vmatpush3.bf16.msra.mxu0 %v7989_v31 }
  0x37   :  { %7424 = vmatpush3.bf16.msra.mxu1 %v7990_v32  ;;  %7429 = vmatprep.subr.bf16.mxu0 %v8191_v1 }
  0x38   :  { %7437 = vmatprep.subr.bf16.mxu1 %v8191_v1 }
  0x39   :  { %7418 = vmatmul.mubr.msk.bf16.vlgmr.msra.gmra.mxu0 %vm239_vm1, %v8268_v7 }
  0x3a   :  { %7426 = vmatmul.mubr.msk.bf16.vlgmr.msra.gmra.mxu1 %vm239_vm1, %v8270_v8  ;;  %7430 = vmatpush3.bf16.msra.mxu0 %v7991_v33 }
  0x3b   :  { %7438 = vmatpush3.bf16.msra.mxu1 %v7992_v34  ;;  %7431 = vmatprep.subr.bf16.mxu0 %v8191_v1 }
  0x3c   :  { %7439 = vmatprep.subr.bf16.mxu1 %v8191_v1  ;;  %7433 = vmatprep.mubr.msk.bf16.mxu0 %vm8192_vm0, %v8191_v1 }
  0x3d   :  { %7441 = vmatprep.mubr.msk.bf16.mxu1 %vm8192_vm0, %v8191_v1 }
  0x3e   :  { %7432 = vmatpush3.bf16.msra.mxu0 %v7993_v35 }
  0x3f   :  { %7440 = vmatpush3.bf16.msra.mxu1 %v7994_v36  ;;  %7445 = vmatprep.subr.bf16.mxu0 %v8191_v1 }
  0x40   :  { %7453 = vmatprep.subr.bf16.mxu1 %v8191_v1 }
  0x41   :  { %7434 = vmatmul.mubr.msk.bf16.vlgmr.msra.gmra.mxu0 %vm239_vm1, %v8268_v7 }
  0x42   :  { %7442 = vmatmul.mubr.msk.bf16.vlgmr.msra.gmra.mxu1 %vm239_vm1, %v8270_v8  ;;  %7446 = vmatpush3.bf16.msra.mxu0 %v7995_v37 }
  0x43   :  { %7454 = vmatpush3.bf16.msra.mxu1 %v7996_v38  ;;  %7447 = vmatprep.subr.bf16.mxu0 %v8191_v1 }
  0x44   :  { %7455 = vmatprep.subr.bf16.mxu1 %v8191_v1  ;;  %7449 = vmatprep.mubr.msk.bf16.mxu0 %vm8192_vm0, %v8191_v1 }
  0x45   :  { %7457 = vmatprep.mubr.msk.bf16.mxu1 %vm8192_vm0, %v8191_v1 }
  0x46   :  { %7448 = vmatpush3.bf16.msra.mxu0 %v7997_v39 }
  0x47   :  { %7456 = vmatpush3.bf16.msra.mxu1 %v7998_v40  ;;  %7461 = vmatprep.subr.bf16.mxu0 %v8191_v1 }
  0x48   :  { %7469 = vmatprep.subr.bf16.mxu1 %v8191_v1 }
  0x49   :  { %7450 = vmatmul.mubr.msk.bf16.vlgmr.msra.gmra.mxu0 %vm239_vm1, %v8268_v7 }
  0x4a   :  { %7458 = vmatmul.mubr.msk.bf16.vlgmr.msra.gmra.mxu1 %vm239_vm1, %v8270_v8  ;;  %7462 = vmatpush3.bf16.msra.mxu0 %v7999_v41 }
  0x4b   :  { %7470 = vmatpush3.bf16.msra.mxu1 %v8000_v42  ;;  %7463 = vmatprep.subr.bf16.mxu0 %v8191_v1 }
  0x4c   :  { %7471 = vmatprep.subr.bf16.mxu1 %v8191_v1  ;;  %7465 = vmatprep.mubr.msk.bf16.mxu0 %vm8192_vm0, %v8191_v1 }
  0x4d   :  { %7473 = vmatprep.mubr.msk.bf16.mxu1 %vm8192_vm0, %v8191_v1 }
  0x4e   :  { %7464 = vmatpush3.bf16.msra.mxu0 %v8001_v43 }
  0x4f   :  { %7472 = vmatpush3.bf16.msra.mxu1 %v8002_v44  ;;  %7477 = vmatprep.subr.bf16.mxu0 %v8191_v1 }
  0x50   :  { %7485 = vmatprep.subr.bf16.mxu1 %v8191_v1 }
  0x51   :  { %7466 = vmatmul.mubr.msk.bf16.vlgmr.msra.gmra.mxu0 %vm239_vm1, %v8268_v7 }
  0x52   :  { %7474 = vmatmul.mubr.msk.bf16.vlgmr.msra.gmra.mxu1 %vm239_vm1, %v8270_v8  ;;  %7478 = vmatpush3.bf16.msra.mxu0 %v8003_v45 }
  0x53   :  { %7486 = vmatpush3.bf16.msra.mxu1 %v8004_v46  ;;  %7479 = vmatprep.subr.bf16.mxu0 %v8191_v1 }
  0x54   :  { %7487 = vmatprep.subr.bf16.mxu1 %v8191_v1  ;;  %7481 = vmatprep.mubr.msk.bf16.mxu0 %vm8192_vm0, %v8191_v1 }
  0x55   :  { %7489 = vmatprep.mubr.msk.bf16.mxu1 %vm8192_vm0, %v8191_v1 }
  0x56   :  { %7480 = vmatpush3.bf16.msra.mxu0 %v8005_v47 }
  0x57   :  { %7488 = vmatpush3.bf16.msra.mxu1 %v8006_v48  ;;  %7493 = vmatprep.subr.bf16.mxu0 %v8191_v1 }
  0x58   :  { %7501 = vmatprep.subr.bf16.mxu1 %v8191_v1 }
  0x59   :  { %7482 = vmatmul.mubr.msk.bf16.vlgmr.msra.gmra.mxu0 %vm239_vm1, %v8268_v7 }
  0x5a   :  { %7490 = vmatmul.mubr.msk.bf16.vlgmr.msra.gmra.mxu1 %vm239_vm1, %v8270_v8  ;;  %7494 = vmatpush3.bf16.msra.mxu0 %v8007_v49 }
  0x5b   :  { %7502 = vmatpush3.bf16.msra.mxu1 %v8008_v50  ;;  %7495 = vmatprep.subr.bf16.mxu0 %v8191_v1 }
  0x5c   :  { %7503 = vmatprep.subr.bf16.mxu1 %v8191_v1  ;;  %7497 = vmatprep.mubr.msk.bf16.mxu0 %vm8192_vm0, %v8191_v1 }
  0x5d   :  { %7505 = vmatprep.mubr.msk.bf16.mxu1 %vm8192_vm0, %v8191_v1 }
  0x5e   :  { %7496 = vmatpush3.bf16.msra.mxu0 %v8009_v51 }
  0x5f   :  { %7504 = vmatpush3.bf16.msra.mxu1 %v8010_v52  ;;  %7509 = vmatprep.subr.bf16.mxu0 %v8191_v1 }
  0x60   :  { %7517 = vmatprep.subr.bf16.mxu1 %v8191_v1 }
  0x61   :  { %7498 = vmatmul.mubr.msk.bf16.vlgmr.msra.gmra.mxu0 %vm239_vm1, %v8268_v7 }
  0x62   :  { %7506 = vmatmul.mubr.msk.bf16.vlgmr.msra.gmra.mxu1 %vm239_vm1, %v8270_v8  ;;  %7510 = vmatpush3.bf16.msra.mxu0 %v8011_v53 }
  0x63   :  { %7518 = vmatpush3.bf16.msra.mxu1 %v8012_v54  ;;  %7511 = vmatprep.subr.bf16.mxu0 %v8191_v1 }
  0x64   :  { %7519 = vmatprep.subr.bf16.mxu1 %v8191_v1  ;;  %7513 = vmatprep.mubr.msk.bf16.mxu0 %vm8192_vm0, %v8191_v1 }
  0x65   :  { %7521 = vmatprep.mubr.msk.bf16.mxu1 %vm8192_vm0, %v8191_v1 }
  0x66   :  { %7512 = vmatpush3.bf16.msra.mxu0 %v8013_v55 }
  0x67   :  { %7520 = vmatpush3.bf16.msra.mxu1 %v8014_v56  ;;  %7525 = vmatprep.subr.bf16.mxu0 %v8191_v1 }
  0x68   :  { %7533 = vmatprep.subr.bf16.mxu1 %v8191_v1 }
  0x69   :  { %7514 = vmatmul.mubr.msk.bf16.vlgmr.msra.gmra.mxu0 %vm239_vm1, %v8268_v7 }
  0x6a   :  { %7522 = vmatmul.mubr.msk.bf16.vlgmr.msra.gmra.mxu1 %vm239_vm1, %v8270_v8  ;;  %7526 = vmatpush3.bf16.msra.mxu0 %v8015_v57 }
  0x6b   :  { %7534 = vmatpush3.bf16.msra.mxu1 %v8016_v58  ;;  %7527 = vmatprep.subr.bf16.mxu0 %v8191_v1 }
  0x6c   :  { %7535 = vmatprep.subr.bf16.mxu1 %v8191_v1  ;;  %7529 = vmatprep.mubr.msk.bf16.mxu0 %vm8192_vm0, %v8191_v1 }
  0x6d   :  { %7537 = vmatprep.mubr.msk.bf16.mxu1 %vm8192_vm0, %v8191_v1 }
  0x6e   :  { %7528 = vmatpush3.bf16.msra.mxu0 %v8017_v59 }
  0x6f   :  { %7536 = vmatpush3.bf16.msra.mxu1 %v8018_v60  ;;  %7541 = vmatprep.subr.bf16.mxu0 %v8191_v1 }
  0x70   :  { %7549 = vmatprep.subr.bf16.mxu1 %v8191_v1 }
  0x71   :  { %7530 = vmatmul.mubr.msk.bf16.vlgmr.msra.gmra.mxu0 %vm239_vm1, %v8268_v7 }
  0x72   :  { %7538 = vmatmul.mubr.msk.bf16.vlgmr.msra.gmra.mxu1 %vm239_vm1, %v8270_v8  ;;  %7542 = vmatpush3.bf16.msra.mxu0 %v8019_v61 }
  0x73   :  { %7550 = vmatpush3.bf16.msra.mxu1 %v8020_v62  ;;  %7543 = vmatprep.subr.bf16.mxu0 %v8191_v1 }
  0x74   :  { %7551 = vmatprep.subr.bf16.mxu1 %v8191_v1  ;;  %7545 = vmatprep.mubr.msk.bf16.mxu0 %vm8192_vm0, %v8191_v1 }
  0x75   :  { %7553 = vmatprep.mubr.msk.bf16.mxu1 %vm8192_vm0, %v8191_v1 }
  0x76   :  { %7544 = vmatpush3.bf16.msra.mxu0 %v8021_v63 }
  0x77   :  { %7552 = vmatpush3.bf16.msra.mxu1 %v8022_v0  ;;  %7557 = vmatprep.subr.bf16.mxu0 %v8191_v1 }
  0x78   :  { %7565 = vmatprep.subr.bf16.mxu1 %v8191_v1 }
  0x79   :  { %7546 = vmatmul.mubr.msk.bf16.vlgmr.msra.gmra.mxu0 %vm239_vm1, %v8268_v7 }
  0x7a   :  { %7554 = vmatmul.mubr.msk.bf16.vlgmr.msra.gmra.mxu1 %vm239_vm1, %v8270_v8  ;;  %7558 = vmatpush3.bf16.msra.mxu0 %v8023_v2 }
  0x7b   :  { %7566 = vmatpush3.bf16.msra.mxu1 %v8024_v3  ;;  %7559 = vmatprep.subr.bf16.mxu0 %v8191_v1 }
  0x7c   :  { %7567 = vmatprep.subr.bf16.mxu1 %v8191_v1  ;;  %7561 = vmatprep.mubr.msk.bf16.mxu0 %vm8192_vm0, %v8191_v1 }
  0x7d   :  { %7569 = vmatprep.mubr.msk.bf16.mxu1 %vm8192_vm0, %v8191_v1 }
  0x7e   :  { %13 = vsyncpa [#allocation3], 0  ;;  %7560 = vmatpush3.bf16.msra.mxu0 %v8025_v4  ;;  %v8027_v6 = vld [vmem:[%s9565_s1 + $0x208] sm:$0xff]   ;;  %v8028_v9 = vld [vmem:[%s9565_s1 + $0x218] sm:$0xff]   ;;  %vm2858_vm2 = vcmask 31744   ;;  %vm4075_vm3 = vcmask 64512  }
  0x7f   :  { %7568 = vmatpush3.bf16.msra.mxu1 %v8026_v5  ;;  %7573 = vmatprep.subr.bf16.mxu0 %v8191_v1  ;;  %v8029_v10 = vld [vmem:[%s9565_s1 + $0x200] sm:$0xff]   ;;  %v8030_v11 = vld [vmem:[%s9565_s1 + $0x210] sm:$0xff]   ;;  %v8031_v12 = vld [vmem:[%s9565_s1 + $0x228] sm:$0xff]   ;;  %vm5455_vm4 = vcmask 1041408   ;;  %s8194_s24 = smov [#allocation2]  }
  0x80   :  { %7581 = vmatprep.subr.bf16.mxu1 %v8191_v1  ;;  %v8032_v13 = vld [vmem:[%s9565_s1 + $0x238] sm:$0xff]   ;;  %v8033_v14 = vld [vmem:[%s9565_s1 + $0x220] sm:$0xff]   ;;  %v8034_v15 = vld [vmem:[%s9565_s1 + $0x230] sm:$0xff]  }
  0x81   :  { %7562 = vmatmul.mubr.msk.bf16.vlgmr.msra.gmra.mxu0 %vm239_vm1, %v8268_v7  ;;  %v8035_v16 = vld [vmem:[%s9565_s1 + $0x248] sm:$0xff]   ;;  %v8036_v17 = vld [vmem:[%s9565_s1 + $0x258] sm:$0xff]   ;;  %v8037_v18 = vld [vmem:[%s9565_s1 + $0x240] sm:$0xff]  }
  0x82   :  { %7570 = vmatmul.mubr.msk.bf16.vlgmr.msra.gmra.mxu1 %vm239_vm1, %v8270_v8  ;;  %7574 = vmatpush3.bf16.msra.mxu0 %v8027_v6  ;;  %v8038_v19 = vld [vmem:[%s9565_s1 + $0x250] sm:$0xff]   ;;  %v8039_v20 = vld [vmem:[%s9565_s1 + $0x268] sm:$0xff]   ;;  %v8040_v21 = vld [vmem:[%s9565_s1 + $0x278] sm:$0xff]  }
  0x83   :  { %7582 = vmatpush3.bf16.msra.mxu1 %v8028_v9  ;;  %7575 = vmatprep.subr.bf16.mxu0 %v8191_v1  ;;  %v8041_v22 = vld [vmem:[%s9565_s1 + $0x260] sm:$0xff]   ;;  %v8042_v23 = vld [vmem:[%s9565_s1 + $0x270] sm:$0xff]   ;;  %v8043_v24 = vld [vmem:[%s9565_s1 + $0x288] sm:$0xff]  }
  0x84   :  { %7583 = vmatprep.subr.bf16.mxu1 %v8191_v1  ;;  %7577 = vmatprep.mubr.msk.bf16.mxu0 %vm8192_vm0, %v8191_v1  ;;  %v8044_v25 = vld [vmem:[%s9565_s1 + $0x298] sm:$0xff]   ;;  %v8045_v26 = vld [vmem:[%s9565_s1 + $0x280] sm:$0xff]   ;;  %v8046_v27 = vld [vmem:[%s9565_s1 + $0x290] sm:$0xff]  }
  0x85   :  { %7585 = vmatprep.mubr.msk.bf16.mxu1 %vm8192_vm0, %v8191_v1  ;;  %v8047_v28 = vld [vmem:[%s9565_s1 + $0x2a8] sm:$0xff]   ;;  %v8048_v29 = vld [vmem:[%s9565_s1 + $0x2b8] sm:$0xff]   ;;  %v8049_v30 = vld [vmem:[%s9565_s1 + $0x2a0] sm:$0xff]  }
  0x86   :  { %7576 = vmatpush3.bf16.msra.mxu0 %v8029_v10  ;;  %v8050_v31 = vld [vmem:[%s9565_s1 + $0x2b0] sm:$0xff]   ;;  %v8051_v32 = vld [vmem:[%s9565_s1 + $0x2c8] sm:$0xff]   ;;  %v8052_v33 = vld [vmem:[%s9565_s1 + $0x2d8] sm:$0xff]  }
  0x87   :  { %7584 = vmatpush3.bf16.msra.mxu1 %v8030_v11  ;;  %7589 = vmatprep.subr.bf16.mxu0 %v8191_v1  ;;  %v8053_v34 = vld [vmem:[%s9565_s1 + $0x2c0] sm:$0xff]   ;;  %v8054_v35 = vld [vmem:[%s9565_s1 + $0x2d0] sm:$0xff]   ;;  %v8055_v36 = vld [vmem:[%s9565_s1 + $0x2e8] sm:$0xff]  }
  0x88   :  { %7597 = vmatprep.subr.bf16.mxu1 %v8191_v1  ;;  %v8056_v37 = vld [vmem:[%s9565_s1 + $0x2f8] sm:$0xff]   ;;  %v8057_v38 = vld [vmem:[%s9565_s1 + $0x2e0] sm:$0xff]   ;;  %v8058_v39 = vld [vmem:[%s9565_s1 + $0x2f0] sm:$0xff]   ;;  %s6754_s1 = sshll.u32 %s8194_s24, 4  ;;  %s6755_s1 = int_to_ptr.vmem [resolvable:$true] %s6754_s1 }
  0x89   :  { %7578 = vmatmul.mubr.msk.bf16.vlgmr.msra.gmra.mxu0 %vm239_vm1, %v8268_v7  ;;  %s8169_s25 = scalar_lea.vmem %s6755_s1, 256  ;;  %p8174_p1 = scmp.lt.s32.totalorder %s6755_s1, %s6755_s1 }
  0x8a   :  { %7586 = vmatmul.mubr.msk.bf16.vlgmr.msra.gmra.mxu1 %vm239_vm1, %v8270_v8  ;;  %7590 = vmatpush3.bf16.msra.mxu0 %v8031_v12  ;;  %p8170_p0 = scmp.ne.s32.totalorder %s6755_s1, %s8169_s25  ;;  %p8175_p2 = scmp.lt.s32.totalorder %s8169_s25, %s8169_s25 }
  0x8b   :  { %7598 = vmatpush3.bf16.msra.mxu1 %v8032_v13  ;;  %7591 = vmatprep.subr.bf16.mxu0 %v8191_v1 }
  0x8c   :  { %7599 = vmatprep.subr.bf16.mxu1 %v8191_v1  ;;  %7593 = vmatprep.mubr.msk.bf16.mxu0 %vm8192_vm0, %v8191_v1  ;;  %p8176_p3 = por %p8175_p2, %p8174_p1 }
  0x8d   :  { %7601 = vmatprep.mubr.msk.bf16.mxu1 %vm8192_vm0, %v8191_v1 }
  0x8e   :  { %7592 = vmatpush3.bf16.msra.mxu0 %v8033_v14  ;;  %p8177_p4 = pnand %p8176_p3, %p8170_p0 }
  0x8f   :  { %7600 = vmatpush3.bf16.msra.mxu1 %v8034_v15  ;;  %7605 = vmatprep.subr.bf16.mxu0 %v8191_v1 }
  0x90   :  { %7613 = vmatprep.subr.bf16.mxu1 %v8191_v1 }
  0x91   :  { %7594 = vmatmul.mubr.msk.bf16.vlgmr.msra.gmra.mxu0 %vm239_vm1, %v8268_v7 }
  0x92   :  { %7602 = vmatmul.mubr.msk.bf16.vlgmr.msra.gmra.mxu1 %vm239_vm1, %v8270_v8  ;;  %7606 = vmatpush3.bf16.msra.mxu0 %v8035_v16 }
  0x93   :  { %7614 = vmatpush3.bf16.msra.mxu1 %v8036_v17  ;;  %7607 = vmatprep.subr.bf16.mxu0 %v8191_v1 }
  0x94   :  { %7615 = vmatprep.subr.bf16.mxu1 %v8191_v1  ;;  %7609 = vmatprep.mubr.msk.bf16.mxu0 %vm8192_vm0, %v8191_v1 }
  0x95   :  { %7617 = vmatprep.mubr.msk.bf16.mxu1 %vm8192_vm0, %v8191_v1 }
  0x96   :  { %7608 = vmatpush3.bf16.msra.mxu0 %v8037_v18 }
  0x97   :  { %7616 = vmatpush3.bf16.msra.mxu1 %v8038_v19  ;;  %7621 = vmatprep.subr.bf16.mxu0 %v8191_v1 }
  0x98   :  { %7629 = vmatprep.subr.bf16.mxu1 %v8191_v1 }
  0x99   :  { %7610 = vmatmul.mubr.msk.bf16.vlgmr.msra.gmra.mxu0 %vm239_vm1, %v8268_v7 }
  0x9a   :  { %7618 = vmatmul.mubr.msk.bf16.vlgmr.msra.gmra.mxu1 %vm239_vm1, %v8270_v8  ;;  %7622 = vmatpush3.bf16.msra.mxu0 %v8039_v20 }
  0x9b   :  { %7630 = vmatpush3.bf16.msra.mxu1 %v8040_v21  ;;  %7623 = vmatprep.subr.bf16.mxu0 %v8191_v1 }
  0x9c   :  { %7631 = vmatprep.subr.bf16.mxu1 %v8191_v1  ;;  %7625 = vmatprep.mubr.msk.bf16.mxu0 %vm8192_vm0, %v8191_v1 }
  0x9d   :  { %7633 = vmatprep.mubr.msk.bf16.mxu1 %vm8192_vm0, %v8191_v1 }
  0x9e   :  { %7624 = vmatpush3.bf16.msra.mxu0 %v8041_v22 }
  0x9f   :  { %7632 = vmatpush3.bf16.msra.mxu1 %v8042_v23  ;;  %7637 = vmatprep.subr.bf16.mxu0 %v8191_v1 }
  0xa0   :  { %7645 = vmatprep.subr.bf16.mxu1 %v8191_v1 }
  0xa1   :  { %7626 = vmatmul.mubr.msk.bf16.vlgmr.msra.gmra.mxu0 %vm239_vm1, %v8268_v7 }
  0xa2   :  { %7634 = vmatmul.mubr.msk.bf16.vlgmr.msra.gmra.mxu1 %vm239_vm1, %v8270_v8  ;;  %7638 = vmatpush3.bf16.msra.mxu0 %v8043_v24 }
  0xa3   :  { %7646 = vmatpush3.bf16.msra.mxu1 %v8044_v25  ;;  %7639 = vmatprep.subr.bf16.mxu0 %v8191_v1 }
  0xa4   :  { %7647 = vmatprep.subr.bf16.mxu1 %v8191_v1  ;;  %7641 = vmatprep.mubr.msk.bf16.mxu0 %vm8192_vm0, %v8191_v1 }
  0xa5   :  { %7649 = vmatprep.mubr.msk.bf16.mxu1 %vm8192_vm0, %v8191_v1 }
  0xa6   :  { %7640 = vmatpush3.bf16.msra.mxu0 %v8045_v26 }
  0xa7   :  { %7648 = vmatpush3.bf16.msra.mxu1 %v8046_v27  ;;  %7653 = vmatprep.subr.bf16.mxu0 %v8191_v1 }
  0xa8   :  { %7661 = vmatprep.subr.bf16.mxu1 %v8191_v1 }
  0xa9   :  { %7642 = vmatmul.mubr.msk.bf16.vlgmr.msra.gmra.mxu0 %vm239_vm1, %v8268_v7 }
  0xaa   :  { %7650 = vmatmul.mubr.msk.bf16.vlgmr.msra.gmra.mxu1 %vm239_vm1, %v8270_v8  ;;  %7654 = vmatpush3.bf16.msra.mxu0 %v8047_v28 }
  0xab   :  { %7662 = vmatpush3.bf16.msra.mxu1 %v8048_v29  ;;  %7655 = vmatprep.subr.bf16.mxu0 %v8191_v1 }
  0xac   :  { %7663 = vmatprep.subr.bf16.mxu1 %v8191_v1  ;;  %7657 = vmatprep.mubr.msk.bf16.mxu0 %vm8192_vm0, %v8191_v1 }
  0xad   :  { %7665 = vmatprep.mubr.msk.bf16.mxu1 %vm8192_vm0, %v8191_v1 }
  0xae   :  { %7656 = vmatpush3.bf16.msra.mxu0 %v8049_v30 }
  0xaf   :  { %7664 = vmatpush3.bf16.msra.mxu1 %v8050_v31  ;;  %7669 = vmatprep.subr.bf16.mxu0 %v8191_v1 }
  0xb0   :  { %7677 = vmatprep.subr.bf16.mxu1 %v8191_v1 }
  0xb1   :  { %7658 = vmatmul.mubr.msk.bf16.vlgmr.msra.gmra.mxu0 %vm239_vm1, %v8268_v7 }
  0xb2   :  { %7666 = vmatmul.mubr.msk.bf16.vlgmr.msra.gmra.mxu1 %vm239_vm1, %v8270_v8  ;;  %7670 = vmatpush3.bf16.msra.mxu0 %v8051_v32 }
  0xb3   :  { %7678 = vmatpush3.bf16.msra.mxu1 %v8052_v33  ;;  %7671 = vmatprep.subr.bf16.mxu0 %v8191_v1 }
  0xb4   :  { %7679 = vmatprep.subr.bf16.mxu1 %v8191_v1  ;;  %7673 = vmatprep.mubr.msk.bf16.mxu0 %vm8192_vm0, %v8191_v1 }
  0xb5   :  { %7681 = vmatprep.mubr.msk.bf16.mxu1 %vm8192_vm0, %v8191_v1 }
  0xb6   :  { %7672 = vmatpush3.bf16.msra.mxu0 %v8053_v34 }
  0xb7   :  { %7680 = vmatpush3.bf16.msra.mxu1 %v8054_v35  ;;  %7685 = vmatprep.subr.bf16.mxu0 %v8191_v1 }
  0xb8   :  { %7693 = vmatprep.subr.bf16.mxu1 %v8191_v1 }
  0xb9   :  { %7674 = vmatmul.mubr.msk.bf16.vlgmr.msra.gmra.mxu0 %vm239_vm1, %v8268_v7 }
  0xba   :  { %7682 = vmatmul.mubr.msk.bf16.vlgmr.msra.gmra.mxu1 %vm239_vm1, %v8270_v8  ;;  %7686 = vmatpush3.bf16.msra.mxu0 %v8055_v36 }
  0xbb   :  { %7694 = vmatpush3.bf16.msra.mxu1 %v8056_v37  ;;  %7687 = vmatprep.subr.bf16.mxu0 %v8191_v1 }
  0xbc   :  { %7695 = vmatprep.subr.bf16.mxu1 %v8191_v1  ;;  %7689 = vmatprep.mubr.msk.bf16.mxu0 %vm8192_vm0, %v8191_v1 }
  0xbd   :  { %7697 = vmatprep.mubr.msk.bf16.mxu1 %vm8192_vm0, %v8191_v1 }
  0xbe   :  { %7688 = vmatpush3.bf16.msra.mxu0 %v8057_v38 }
  0xbf   :  { %7696 = vmatpush3.bf16.msra.mxu1 %v8058_v39  ;;  %7701 = vmatprep.subr.mxu0 %v8191_v1 }
  0xc0   :  { %7706 = vmatprep.subr.mxu1 %v8191_v1 }
  0xc1   :  { %7690 = vmatmul.mubr.msk.bf16.vlgmr.msra.gmra.mxu0 %vm239_vm1, %v8268_v7 }
  0xc2   :  { %7698 = vmatmul.mubr.msk.bf16.vlgmr.msra.gmra.mxu1 %vm239_vm1, %v8270_v8  ;;  %7703 = vmatprep.mubr.msk.f32.mxu0 %vm8192_vm0, %v8191_v1 }
  0xc3   :  { %7708 = vmatprep.mubr.msk.f32.mxu1 %vm8192_vm0, %v8191_v1 }
  0xc9   :  { %v8834_v40 = vpop.f32.mrf.mxu0 }
  0xca   :  { %v8836_v41 = vpop.f32.mrf.mxu1 }
  0xcb   :  { %v7323_v42 = vpop.f32.mrf.mxu0 }
  0xcc   :  { %v7331_v43 = vpop.f32.mrf.mxu1  ;;  %v6909_v42 = vld [vmem:[%s9566_s2] ss:$0 sm:$0xff] }
  0xcd   :  { %v280_v44 = vpop.f32.mrf.mxu0 }
  0xce   :  { %v335_v45 = vpop.f32.mrf.mxu1  ;;  %v6910_v44 = vld [vmem:[%s9566_s2 + $0x1] ss:$0 sm:$0xff] }
  0xcf   :  { %v7324_v46 = vpop.f32.mrf.mxu0 }
  0xd0   :  { %v7332_v47 = vpop.f32.mrf.mxu1 }
  0xd1   :  { %v8838_v7 = vpop.f32.mrf.mxu0  ;;  %v2842_v47 = vadd.f32 %v6909_v42, %v8834_v40 }
  0xd2   :  { %v8840_v48 = vpop.f32.mrf.mxu1 }
  0xd3   :  { %v7339_v8 = vpop.f32.mrf.mxu0 }
  0xd4   :  { %v7347_v49 = vpop.f32.mrf.mxu1 }
  0xd5   :  { %v387_v50 = vpop.f32.mrf.mxu0  ;;  %v2843_v49 = vadd.f32 %v6910_v44, %v8836_v41  ;;  %v6911_v41 = vld [vmem:[%s9566_s2 + $0x2] ss:$0 sm:$0xff] }
  0xd6   :  { %v439_v51 = vpop.f32.mrf.mxu1 }
  0xd7   :  { %v7340_v52 = vpop.f32.mrf.mxu0 }
  0xd8   :  { %v7348_v53 = vpop.f32.mrf.mxu1 }
  0xd9   :  { %v8842_v54 = vpop.f32.mrf.mxu0 }
  0xda   :  { %v8844_v55 = vpop.f32.mrf.mxu1 }
  0xdb   :  { %v7355_v56 = vpop.f32.mrf.mxu0 }
  0xdc   :  { %v7363_v57 = vpop.f32.mrf.mxu1  ;;  %v6912_v56 = vld [vmem:[%s9566_s2 + $0x3] ss:$0 sm:$0xff] }
  0xdd   :  { %v491_v58 = vpop.f32.mrf.mxu0 }
  0xde   :  { %v543_v59 = vpop.f32.mrf.mxu1 }
  0xdf   :  { %v7356_v60 = vpop.f32.mrf.mxu0  ;;  %v2844_v59 = vadd.f32 %v6911_v41, %v8838_v7 }
  0xe0   :  { %v7364_v61 = vpop.f32.mrf.mxu1 }
  0xe1   :  { %v8846_v62 = vpop.f32.mrf.mxu0  ;;  %v2845_v61 = vadd.f32 %v6912_v56, %v8840_v48  ;;  %v6913_v48 = vld [vmem:[%s9566_s2 + $0x4] ss:$0 sm:$0xff] }
  0xe2   :  { %v8848_v63 = vpop.f32.mrf.mxu1 }
  0xe3   :  { %v7371_v0 = vpop.f32.mrf.mxu0 }
  0xe4   :  { %v7379_v2 = vpop.f32.mrf.mxu1 }
  0xe5   :  { %v595_v3 = vpop.f32.mrf.mxu0 }
  0xe6   :  { %v647_v4 = vpop.f32.mrf.mxu1 }
  0xe7   :  { %v7372_v5 = vpop.f32.mrf.mxu0 }
  0xe8   :  { %v7380_v6 = vpop.f32.mrf.mxu1  ;;  %v6914_v5 = vld [vmem:[%s9566_s2 + $0x5] ss:$0 sm:$0xff] }
  0xe9   :  { %v8850_v9 = vpop.f32.mrf.mxu0 }
  0xea   :  { %v8852_v10 = vpop.f32.mrf.mxu1 }
  0xeb   :  { %v7387_v11 = vpop.f32.mrf.mxu0 }
  0xec   :  { %v7395_v12 = vpop.f32.mrf.mxu1 }
  0xed   :  { %v699_v13 = vpop.f32.mrf.mxu0  ;;  %v2846_v12 = vadd.f32 %v6913_v48, %v8842_v54 }
  0xee   :  { %v751_v14 = vpop.f32.mrf.mxu1 }
  0xef   :  { %v7388_v15 = vpop.f32.mrf.mxu0  ;;  %v2847_v14 = vadd.f32 %v6914_v5, %v8844_v55  ;;  %v6915_v55 = vld [vmem:[%s9566_s2 + $0x6] ss:$0 sm:$0xff] }
  0xf0   :  { %v7396_v16 = vpop.f32.mrf.mxu1 }
  0xf1   :  { %v8854_v17 = vpop.f32.mrf.mxu0 }
  0xf2   :  { %v8856_v18 = vpop.f32.mrf.mxu1 }
  0xf3   :  { %v7403_v19 = vpop.f32.mrf.mxu0 }
  0xf4   :  { %v7411_v20 = vpop.f32.mrf.mxu1 }
  0xf5   :  { %v803_v21 = vpop.f32.mrf.mxu0 }
  0xf6   :  { %v855_v22 = vpop.f32.mrf.mxu1  ;;  %v6916_v21 = vld [vmem:[%s9566_s2 + $0x7] ss:$0 sm:$0xff] }
  0xf7   :  { %v7404_v23 = vpop.f32.mrf.mxu0 }
  0xf8   :  { %v7412_v24 = vpop.f32.mrf.mxu1 }
  0xf9   :  { %v8858_v25 = vpop.f32.mrf.mxu0  ;;  %v2848_v24 = vadd.f32 %v6915_v55, %v8846_v62 }
  0xfa   :  { %v8860_v26 = vpop.f32.mrf.mxu1 }
  0xfb   :  { %v7419_v27 = vpop.f32.mrf.mxu0 }
  0xfc   :  { %v7427_v28 = vpop.f32.mrf.mxu1 }
  0xfd   :  { %v907_v29 = vpop.f32.mrf.mxu0  ;;  %v2849_v28 = vadd.f32 %v6916_v21, %v8848_v63  ;;  %v6917_v63 = vld [vmem:[%s9566_s2 + $0x8] ss:$0 sm:$0xff] }
  0xfe   :  { %v959_v30 = vpop.f32.mrf.mxu1 }
  0xff   :  { %v7420_v31 = vpop.f32.mrf.mxu0 }
 0x100   :  { %v7428_v32 = vpop.f32.mrf.mxu1 }
 0x101   :  { %v8862_v33 = vpop.f32.mrf.mxu0 }
 0x102   :  { %v8864_v34 = vpop.f32.mrf.mxu1 }
 0x103   :  { %v7435_v35 = vpop.f32.mrf.mxu0 }
 0x104   :  { %v7443_v36 = vpop.f32.mrf.mxu1  ;;  %v6918_v35 = vld [vmem:[%s9566_s2 + $0x9] ss:$0 sm:$0xff] }
 0x105   :  { %v1011_v37 = vpop.f32.mrf.mxu0  ;;  %v2851_v42 = vadd.f32 %v6918_v35, %v8852_v10  ;;  %v6919_v10 = vld [vmem:[%s9566_s2 + $0xa] ss:$0 sm:$0xff] }
 0x106   :  { %v1063_v38 = vpop.f32.mrf.mxu1 }
 0x107   :  { %v7436_v39 = vpop.f32.mrf.mxu0  ;;  %v2850_v38 = vadd.f32 %v6917_v63, %v8850_v9 }
 0x108   :  { %v7444_v43 = vpop.f32.mrf.mxu1 }
 0x109   :  { %v1112_v45 = vpop.f32.mrf.mxu0 }
 0x10a   :  { %v1164_v46 = vpop.f32.mrf.mxu1  ;;  %7702 = vmatpush3.xpose.msk.msra.mxu0 %vm2858_vm2, %v1112_v45 }
 0x10b   :  { %7707 = vmatpush3.xpose.msk.msra.mxu1 %vm2858_vm2, %v1164_v46  ;;  %v7451_v8 = vpop.f32.mrf.mxu0  ;;  %7711 = vmatprep.subr.mxu0 %v8191_v1 }
 0x10c   :  { %v7459_v50 = vpop.f32.mrf.mxu1  ;;  %7716 = vmatprep.subr.mxu1 %v8191_v1 }
 0x10d   :  { %v1115_v51 = vpop.f32.mrf.mxu0  ;;  %7704 = vmatmul.mubr.msk.f32.vlgmr.msra.gmra.mxu0 %vm2858_vm2, %v2842_v47  ;;  %v6920_v47 = vld [vmem:[%s9566_s2 + $0xb] ss:$0 sm:$0xff]  ;;  %v2852_v50 = vadd.f32 %v6919_v10, %v8854_v17 }
 0x10e   :  { %v1167_v52 = vpop.f32.mrf.mxu1  ;;  %7709 = vmatmul.mubr.msk.f32.vlgmr.msra.gmra.mxu1 %vm2858_vm2, %v2843_v49  ;;  %7713 = vmatprep.mubr.msk.f32.mxu0 %vm8192_vm0, %v8191_v1 }
 0x10f   :  { %v7452_v40 = vpop.f32.mrf.mxu0  ;;  %7718 = vmatprep.mubr.msk.f32.mxu1 %vm8192_vm0, %v8191_v1  ;;  %v2853_v52 = vadd.f32 %v6920_v47, %v8856_v18  ;;  %v6921_v18 = vld [vmem:[%s9566_s2 + $0xc] ss:$0 sm:$0xff] }
 0x110   :  { %v7460_v53 = vpop.f32.mrf.mxu1 }
 0x111   :  { %v1216_v57 = vpop.f32.mrf.mxu0 }
 0x112   :  { %v1268_v58 = vpop.f32.mrf.mxu1  ;;  %7712 = vmatpush3.xpose.msk.msra.mxu0 %vm2858_vm2, %v1216_v57  ;;  %v6922_v57 = vld [vmem:[%s9566_s2 + $0xd] ss:$0 sm:$0xff] }
 0x113   :  { %7717 = vmatpush3.xpose.msk.msra.mxu1 %vm2858_vm2, %v1268_v58  ;;  %v7467_v60 = vpop.f32.mrf.mxu0  ;;  %7721 = vmatprep.subr.mxu0 %v8191_v1 }
 0x114   :  { %v7475_v0 = vpop.f32.mrf.mxu1  ;;  %7726 = vmatprep.subr.mxu1 %v8191_v1  ;;  %v2854_v60 = vadd.f32 %v6921_v18, %v8858_v25 }
 0x115   :  { %v1219_v2 = vpop.f32.mrf.mxu0  ;;  %7714 = vmatmul.mubr.msk.f32.vlgmr.msra.gmra.mxu0 %vm2858_vm2, %v2844_v59  ;;  %v2855_v0 = vadd.f32 %v6922_v57, %v8860_v26  ;;  %v6923_v26 = vld [vmem:[%s9566_s2 + $0xe] ss:$0 sm:$0xff] }
 0x116   :  { %v1271_v3 = vpop.f32.mrf.mxu1  ;;  %7719 = vmatmul.mubr.msk.f32.vlgmr.msra.gmra.mxu1 %vm2858_vm2, %v2845_v61  ;;  %7723 = vmatprep.mubr.msk.f32.mxu0 %vm8192_vm0, %v8191_v1 }
 0x117   :  { %v7468_v7 = vpop.f32.mrf.mxu0  ;;  %7728 = vmatprep.mubr.msk.f32.mxu1 %vm8192_vm0, %v8191_v1 }
 0x118   :  { %v7476_v4 = vpop.f32.mrf.mxu1 }
 0x119   :  { %v1320_v6 = vpop.f32.mrf.mxu0  ;;  %v6924_v4 = vld [vmem:[%s9566_s2 + $0xf] ss:$0 sm:$0xff] }
 0x11a   :  { %v1372_v11 = vpop.f32.mrf.mxu1  ;;  %7722 = vmatpush3.xpose.msk.msra.mxu0 %vm2858_vm2, %v1320_v6 }
 0x11b   :  { %7727 = vmatpush3.xpose.msk.msra.mxu1 %vm2858_vm2, %v1372_v11  ;;  %v7483_v13 = vpop.f32.mrf.mxu0  ;;  %7731 = vmatprep.subr.mxu0 %v8191_v1  ;;  %v2856_v11 = vadd.f32 %v6923_v26, %v8862_v33 }
 0x11c   :  { %v7491_v15 = vpop.f32.mrf.mxu1  ;;  %7736 = vmatprep.subr.mxu1 %v8191_v1  ;;  %v2857_v13 = vadd.f32 %v6924_v4, %v8864_v34 }
 0x11d   :  { %v1323_v16 = vpop.f32.mrf.mxu0  ;;  %7724 = vmatmul.mubr.msk.f32.vlgmr.msra.gmra.mxu0 %vm2858_vm2, %v2846_v12 }
 0x11e   :  { %v1375_v19 = vpop.f32.mrf.mxu1  ;;  %7729 = vmatmul.mubr.msk.f32.vlgmr.msra.gmra.mxu1 %vm2858_vm2, %v2847_v14  ;;  %7733 = vmatprep.mubr.msk.f32.mxu0 %vm8192_vm0, %v8191_v1 }
 0x11f   :  { %v7484_v54 = vpop.f32.mrf.mxu0  ;;  %7738 = vmatprep.mubr.msk.f32.mxu1 %vm8192_vm0, %v8191_v1 }
 0x120   :  { %v7492_v20 = vpop.f32.mrf.mxu1 }
 0x121   :  { %v1424_v22 = vpop.f32.mrf.mxu0 }
 0x122   :  { %v1476_v23 = vpop.f32.mrf.mxu1  ;;  %7732 = vmatpush3.xpose.msk.msra.mxu0 %vm2858_vm2, %v1424_v22 }
 0x123   :  { %7737 = vmatpush3.xpose.msk.msra.mxu1 %vm2858_vm2, %v1476_v23  ;;  %v7499_v27 = vpop.f32.mrf.mxu0  ;;  %7741 = vmatprep.subr.mxu0 %v8191_v1 }
 0x124   :  { %v7507_v29 = vpop.f32.mrf.mxu1  ;;  %7746 = vmatprep.subr.mxu1 %v8191_v1 }
 0x125   :  { %v1427_v30 = vpop.f32.mrf.mxu0  ;;  %7734 = vmatmul.mubr.msk.f32.vlgmr.msra.gmra.mxu0 %vm2858_vm2, %v2848_v24 }
 0x126   :  { %v1479_v31 = vpop.f32.mrf.mxu1  ;;  %7739 = vmatmul.mubr.msk.f32.vlgmr.msra.gmra.mxu1 %vm2858_vm2, %v2849_v28  ;;  %7743 = vmatprep.mubr.msk.f32.mxu0 %vm8192_vm0, %v8191_v1 }
 0x127   :  { %v7500_v62 = vpop.f32.mrf.mxu0  ;;  %7748 = vmatprep.mubr.msk.f32.mxu1 %vm8192_vm0, %v8191_v1 }
 0x128   :  { %v7508_v32 = vpop.f32.mrf.mxu1 }
 0x129   :  { %v1528_v36 = vpop.f32.mrf.mxu0 }
 0x12a   :  { %v1580_v37 = vpop.f32.mrf.mxu1  ;;  %7742 = vmatpush3.xpose.msk.msra.mxu0 %vm2858_vm2, %v1528_v36 }
 0x12b   :  { %7747 = vmatpush3.xpose.msk.msra.mxu1 %vm2858_vm2, %v1580_v37  ;;  %v7515_v39 = vpop.f32.mrf.mxu0  ;;  %7751 = vmatprep.subr.mxu0 %v8191_v1 }
 0x12c   :  { %v7523_v43 = vpop.f32.mrf.mxu1  ;;  %7756 = vmatprep.subr.mxu1 %v8191_v1 }
 0x12d   :  { %v1531_v44 = vpop.f32.mrf.mxu0  ;;  %7744 = vmatmul.mubr.msk.f32.vlgmr.msra.gmra.mxu0 %vm2858_vm2, %v2850_v38 }
 0x12e   :  { %v1583_v45 = vpop.f32.mrf.mxu1  ;;  %7749 = vmatmul.mubr.msk.f32.vlgmr.msra.gmra.mxu1 %vm2858_vm2, %v2851_v42  ;;  %7753 = vmatprep.mubr.msk.f32.mxu0 %vm8192_vm0, %v8191_v1 }
 0x12f   :  { %v7516_v9 = vpop.f32.mrf.mxu0  ;;  %7758 = vmatprep.mubr.msk.f32.mxu1 %vm8192_vm0, %v8191_v1 }
 0x130   :  { %v7524_v46 = vpop.f32.mrf.mxu1 }
 0x131   :  { %v1632_v8 = vpop.f32.mrf.mxu0 }
 0x132   :  { %v1684_v49 = vpop.f32.mrf.mxu1  ;;  %7752 = vmatpush3.xpose.msk.msra.mxu0 %vm2858_vm2, %v1632_v8 }
 0x133   :  { %7757 = vmatpush3.xpose.msk.msra.mxu1 %vm2858_vm2, %v1684_v49  ;;  %v7531_v51 = vpop.f32.mrf.mxu0  ;;  %7761 = vmatprep.subr.mxu0 %v8191_v1 }
 0x134   :  { %v7539_v40 = vpop.f32.mrf.mxu1  ;;  %7766 = vmatprep.subr.mxu1 %v8191_v1 }
 0x135   :  { %v1635_v41 = vpop.f32.mrf.mxu0  ;;  %7754 = vmatmul.mubr.msk.f32.vlgmr.msra.gmra.mxu0 %vm2858_vm2, %v2852_v50 }
 0x136   :  { %v1687_v53 = vpop.f32.mrf.mxu1  ;;  %7759 = vmatmul.mubr.msk.f32.vlgmr.msra.gmra.mxu1 %vm2858_vm2, %v2853_v52  ;;  %7763 = vmatprep.mubr.msk.f32.mxu0 %vm8192_vm0, %v8191_v1 }
 0x137   :  { %v7532_v17 = vpop.f32.mrf.mxu0  ;;  %7768 = vmatprep.mubr.msk.f32.mxu1 %vm8192_vm0, %v8191_v1 }
 0x138   :  { %v7540_v56 = vpop.f32.mrf.mxu1 }
 0x139   :  { %v1736_v58 = vpop.f32.mrf.mxu0 }
 0x13a   :  { %v1788_v59 = vpop.f32.mrf.mxu1  ;;  %7762 = vmatpush3.xpose.msk.msra.mxu0 %vm2858_vm2, %v1736_v58 }
 0x13b   :  { %7767 = vmatpush3.xpose.msk.msra.mxu1 %vm2858_vm2, %v1788_v59  ;;  %v7547_v61 = vpop.f32.mrf.mxu0  ;;  %7771 = vmatprep.subr.mxu0 %v8191_v1 }
 0x13c   :  { %v7555_v2 = vpop.f32.mrf.mxu1  ;;  %7776 = vmatprep.subr.mxu1 %v8191_v1 }
 0x13d   :  { %v1739_v3 = vpop.f32.mrf.mxu0  ;;  %7764 = vmatmul.mubr.msk.f32.vlgmr.msra.gmra.mxu0 %vm2858_vm2, %v2854_v60 }
 0x13e   :  { %v1791_v7 = vpop.f32.mrf.mxu1  ;;  %7769 = vmatmul.mubr.msk.f32.vlgmr.msra.gmra.mxu1 %vm2858_vm2, %v2855_v0  ;;  %7773 = vmatprep.mubr.msk.f32.mxu0 %vm8192_vm0, %v8191_v1 }
 0x13f   :  { %v7548_v25 = vpop.f32.mrf.mxu0  ;;  %7778 = vmatprep.mubr.msk.f32.mxu1 %vm8192_vm0, %v8191_v1 }
 0x140   :  { %v7556_v48 = vpop.f32.mrf.mxu1 }
 0x141   :  { %v1840_v5 = vpop.f32.mrf.mxu0 }
 0x142   :  { %v1892_v6 = vpop.f32.mrf.mxu1  ;;  %7772 = vmatpush3.xpose.msk.msra.mxu0 %vm2858_vm2, %v1840_v5 }
 0x143   :  { %7777 = vmatpush3.xpose.msk.msra.mxu1 %vm2858_vm2, %v1892_v6  ;;  %v7563_v12 = vpop.f32.mrf.mxu0  ;;  %7781 = vmatprep.subr.mxu0 %v8191_v1 }
 0x144   :  { %v7571_v14 = vpop.f32.mrf.mxu1  ;;  %7786 = vmatprep.subr.mxu1 %v8191_v1 }
 0x145   :  { %7774 = vmatmul.mubr.msk.f32.vlgmr.msra.gmra.mxu0 %vm2858_vm2, %v2856_v11  ;;  %v1843_v15 = vpop.f32.mrf.mxu0 }
 0x146   :  { %7779 = vmatmul.mubr.msk.f32.vlgmr.msra.gmra.mxu1 %vm2858_vm2, %v2857_v13  ;;  %v1895_v16 = vpop.f32.mrf.mxu1  ;;  %7783 = vmatprep.mubr.msk.f32.mxu0 %vm8192_vm0, %v8191_v1 }
 0x147   :  { %v7564_v33 = vpop.f32.mrf.mxu0  ;;  %7788 = vmatprep.mubr.msk.f32.mxu1 %vm8192_vm0, %v8191_v1 }
 0x148   :  { %v7572_v19 = vpop.f32.mrf.mxu1 }
 0x149   :  { %v1944_v54 = vpop.f32.mrf.mxu0 }
 0x14a   :  { %v1996_v55 = vpop.f32.mrf.mxu1  ;;  %7782 = vmatpush3.msra.mxu0 %v1944_v54 }
 0x14b   :  { %v7579_v34 = vpop.f32.mrf.mxu0  ;;  %7787 = vmatpush3.msra.mxu1 %v1996_v55  ;;  %7791 = vmatprep.subr.mxu0 %v8191_v1 }
 0x14c   :  { %v7587_v20 = vpop.f32.mrf.mxu1  ;;  %7796 = vmatprep.subr.mxu1 %v8191_v1 }
 0x14d   :  { %v1947_v21 = vpop.f32.mrf.mxu0 }
 0x14e   :  { %v1999_v22 = vpop.f32.mrf.mxu1 }
 0x14f   :  { %v7580_v23 = vpop.f32.mrf.mxu0 }
 0x150   :  { %v7588_v24 = vpop.f32.mrf.mxu1 }
 0x151   :  { %v9012_v27 = vpop.f32.mrf.mxu0 }
 0x152   :  { %v9014_v28 = vpop.f32.mrf.mxu1 }
 0x153   :  { %v7595_v29 = vpop.f32.mrf.mxu0 }
 0x154   :  { %v7603_v30 = vpop.f32.mrf.mxu1 }
 0x155   :  { %v2051_v31 = vpop.f32.mrf.mxu0 }
 0x156   :  { %v2103_v62 = vpop.f32.mrf.mxu1 }
 0x157   :  { %v7596_v63 = vpop.f32.mrf.mxu0 }
 0x158   :  { %v7604_v32 = vpop.f32.mrf.mxu1 }
 0x159   :  { %v9016_v35 = vpop.f32.mrf.mxu0 }
 0x15a   :  { %v9018_v36 = vpop.f32.mrf.mxu1 }
 0x15b   :  { %v7611_v37 = vpop.f32.mrf.mxu0 }
 0x15c   :  { %v7619_v38 = vpop.f32.mrf.mxu1 }
 0x15d   :  { %v2155_v39 = vpop.f32.mrf.mxu0 }
 0x15e   :  { %v2207_v42 = vpop.f32.mrf.mxu1 }
 0x15f   :  { %v7612_v43 = vpop.f32.mrf.mxu0 }
 0x160   :  { %v7620_v44 = vpop.f32.mrf.mxu1 }
 0x161   :  { %v9020_v45 = vpop.f32.mrf.mxu0 }
 0x162   :  { %v9022_v9 = vpop.f32.mrf.mxu1 }
 0x163   :  { %v7627_v10 = vpop.f32.mrf.mxu0 }
 0x164   :  { %v7635_v46 = vpop.f32.mrf.mxu1 }
 0x165   :  { %v2259_v47 = vpop.f32.mrf.mxu0 }
 0x166   :  { %v2311_v8 = vpop.f32.mrf.mxu1 }
 0x167   :  { %v7628_v49 = vpop.f32.mrf.mxu0 }
 0x168   :  { %v7636_v50 = vpop.f32.mrf.mxu1 }
 0x169   :  { %v9024_v51 = vpop.f32.mrf.mxu0 }
 0x16a   :  { %v9026_v52 = vpop.f32.mrf.mxu1 }
 0x16b   :  { %v7643_v40 = vpop.f32.mrf.mxu0 }
 0x16c   :  { %v7651_v41 = vpop.f32.mrf.mxu1 }
 0x16d   :  { %v2363_v53 = vpop.f32.mrf.mxu0 }
 0x16e   :  { %v2415_v17 = vpop.f32.mrf.mxu1 }
 0x16f   :  { %v7644_v18 = vpop.f32.mrf.mxu0 }
 0x170   :  { %v7652_v56 = vpop.f32.mrf.mxu1 }
 0x171   :  { %v9028_v57 = vpop.f32.mrf.mxu0 }
 0x172   :  { %v9030_v58 = vpop.f32.mrf.mxu1 }
 0x173   :  { %v7659_v59 = vpop.f32.mrf.mxu0 }
 0x174   :  { %v7667_v60 = vpop.f32.mrf.mxu1 }
 0x175   :  { %v2467_v61 = vpop.f32.mrf.mxu0 }
 0x176   :  { %v2519_v0 = vpop.f32.mrf.mxu1 }
 0x177   :  { %v7660_v2 = vpop.f32.mrf.mxu0 }
 0x178   :  { %v7668_v3 = vpop.f32.mrf.mxu1 }
 0x179   :  { %v9032_v7 = vpop.f32.mrf.mxu0 }
 0x17a   :  { %v9034_v25 = vpop.f32.mrf.mxu1 }
 0x17b   :  { %v7675_v26 = vpop.f32.mrf.mxu0 }
 0x17c   :  { %v7683_v48 = vpop.f32.mrf.mxu1 }
 0x17d   :  { %v2571_v4 = vpop.f32.mrf.mxu0 }
 0x17e   :  { %v2623_v5 = vpop.f32.mrf.mxu1 }
 0x17f   :  { %v7676_v6 = vpop.f32.mrf.mxu0 }
 0x180   :  { %v7684_v11 = vpop.f32.mrf.mxu1 }
 0x181   :  { %v9036_v12 = vpop.f32.mrf.mxu0 }
 0x182   :  { %v9038_v13 = vpop.f32.mrf.mxu1 }
 0x183   :  { %v7691_v14 = vpop.f32.mrf.mxu0 }
 0x184   :  { %v7699_v15 = vpop.f32.mrf.mxu1 }
 0x185   :  { %v2675_v16 = vpop.f32.mrf.mxu0 }
 0x186   :  { %v2727_v33 = vpop.f32.mrf.mxu1 }
 0x187   :  { %v7692_v19 = vpop.f32.mrf.mxu0 }
 0x188   :  { %v7700_v54 = vpop.f32.mrf.mxu1 }
 0x1cd   :  { %v9040_v55 = vpop.f32.mrf.mxu0 }
 0x1ce   :  { %v9042_v34 = vpop.f32.mrf.mxu1  ;;  %v4076_v20 = vsel %vm4075_vm3, %v9040_v55, -inf }
 0x1cf   :  { %4077 = vmax.xlane.f32.xlu0 %v4076_v20  ;;  %v7705_v21 = vpop.f32.mrf.mxu0  ;;  %v4079_v23 = vsel %vm4075_vm3, %v9042_v34, -inf }
 0x1d0   :  { %v7710_v22 = vpop.f32.mrf.mxu1 }
 0x1d3   :  { %4080 = vmax.xlane.f32.xlu0 %v4079_v23 }
 0x1d5   :  { %v9048_v24 = vpop.f32.mrf.mxu0 }
 0x1d6   :  { %v9050_v29 = vpop.f32.mrf.mxu1  ;;  %v4082_v30 = vsel %vm4075_vm3, %v9048_v24, -inf }
 0x1d7   :  { %4083 = vmax.xlane.f32.xlu1 %v4082_v30  ;;  %v7715_v31 = vpop.f32.mrf.mxu0  ;;  %v4085_v63 = vsel %vm4075_vm3, %v9050_v29, -inf }
 0x1d8   :  { %v7720_v62 = vpop.f32.mrf.mxu1 }
 0x1db   :  { %4086 = vmax.xlane.f32.xlu1 %v4085_v63 }
 0x1dd   :  { %v9056_v32 = vpop.f32.mrf.mxu0 }
 0x1de   :  { %v9058_v37 = vpop.f32.mrf.mxu1  ;;  %v4088_v38 = vsel %vm4075_vm3, %v9056_v32, -inf }
 0x1df   :  { %v4091_v39 = vsel %vm4075_vm3, %v9058_v37, -inf  ;;  %4089 = vmax.xlane.f32.xlu0 %v4088_v38  ;;  %v7725_v42 = vpop.f32.mrf.mxu0 }
 0x1e0   :  { %v7730_v43 = vpop.f32.mrf.mxu1  ;;  %4092 = vmax.xlane.f32.xlu1 %v4091_v39 }
 0x1e5   :  { %v9064_v44 = vpop.f32.mrf.mxu0 }
 0x1e6   :  { %v9066_v10 = vpop.f32.mrf.mxu1  ;;  %v4094_v46 = vsel %vm4075_vm3, %v9064_v44, -inf }
 0x1e7   :  { %v4097_v47 = vsel %vm4075_vm3, %v9066_v10, -inf  ;;  %4095 = vmax.xlane.f32.xlu0 %v4094_v46  ;;  %v7735_v8 = vpop.f32.mrf.mxu0 }
 0x1e8   :  { %v7740_v49 = vpop.f32.mrf.mxu1  ;;  %4098 = vmax.xlane.f32.xlu1 %v4097_v47 }
 0x1ed   :  { %v9072_v50 = vpop.f32.mrf.mxu0 }
 0x1ee   :  { %v9074_v40 = vpop.f32.mrf.mxu1  ;;  %v4100_v41 = vsel %vm4075_vm3, %v9072_v50, -inf }
 0x1ef   :  { %v4103_v53 = vsel %vm4075_vm3, %v9074_v40, -inf  ;;  %4101 = vmax.xlane.f32.xlu0 %v4100_v41  ;;  %v7745_v17 = vpop.f32.mrf.mxu0 }
 0x1f0   :  { %v7750_v18 = vpop.f32.mrf.mxu1  ;;  %4104 = vmax.xlane.f32.xlu1 %v4103_v53 }
 0x1f5   :  { %v9080_v56 = vpop.f32.mrf.mxu0 }
 0x1f6   :  { %v9082_v59 = vpop.f32.mrf.mxu1  ;;  %v4106_v60 = vsel %vm4075_vm3, %v9080_v56, -inf }
 0x1f7   :  { %v4109_v61 = vsel %vm4075_vm3, %v9082_v59, -inf  ;;  %4107 = vmax.xlane.f32.xlu0 %v4106_v60  ;;  %v7755_v0 = vpop.f32.mrf.mxu0 }
 0x1f8   :  { %v7760_v2 = vpop.f32.mrf.mxu1  ;;  %4110 = vmax.xlane.f32.xlu1 %v4109_v61 }
 0x1fd   :  { %v9088_v3 = vpop.f32.mrf.mxu0 }
 0x1fe   :  { %v9090_v26 = vpop.f32.mrf.mxu1  ;;  %v4112_v48 = vsel %vm4075_vm3, %v9088_v3, -inf }
 0x1ff   :  { %v4115_v4 = vsel %vm4075_vm3, %v9090_v26, -inf  ;;  %4113 = vmax.xlane.f32.xlu0 %v4112_v48  ;;  %v7765_v5 = vpop.f32.mrf.mxu0 }
 0x200   :  { %v7770_v6 = vpop.f32.mrf.mxu1  ;;  %4116 = vmax.xlane.f32.xlu1 %v4115_v4 }
 0x205   :  { %v9096_v11 = vpop.f32.mrf.mxu0 }
 0x206   :  { %v9098_v14 = vpop.f32.mrf.mxu1  ;;  %v4118_v15 = vsel %vm4075_vm3, %v9096_v11, -inf }
 0x207   :  { %v4121_v16 = vsel %vm4075_vm3, %v9098_v14, -inf  ;;  %4119 = vmax.xlane.f32.xlu0 %v4118_v15  ;;  %v7775_v33 = vpop.f32.mrf.mxu0 }
 0x208   :  { %v7780_v19 = vpop.f32.mrf.mxu1  ;;  %4122 = vmax.xlane.f32.xlu1 %v4121_v16 }
 0x258   :  { %v4078_v54 = vpop.xlane.xlu0 %4077 }
 0x259   :  { %v4124_v20 = vsub.f32 %v9040_v55, %v4078_v54 }
 0x25b   :  { %v4140_v21 = vmul.f32 1.442695, %v4124_v20 }
 0x25c   :  { %v4081_v22 = vpop.xlane.xlu0 %4080 }
 0x25d   :  { %8103 = vpow2.f32 %v4140_v21  ;;  %v4125_v23 = vsub.f32 %v9042_v34, %v4081_v22 }
 0x25f   :  { %v4142_v30 = vmul.f32 1.442695, %v4125_v23 }
 0x260   :  { %v4084_v31 = vpop.xlane.xlu1 %4083 }
 0x261   :  { %8105 = vpow2.f32 %v4142_v30  ;;  %v4126_v62 = vsub.f32 %v9048_v24, %v4084_v31 }
 0x263   :  { %v4144_v63 = vmul.f32 1.442695, %v4126_v62 }
 0x264   :  { %v4087_v38 = vpop.xlane.xlu1 %4086 }
 0x265   :  { %8107 = vpow2.f32 %v4144_v63  ;;  %v4127_v39 = vsub.f32 %v9050_v29, %v4087_v38 }
 0x267   :  { %v4146_v42 = vmul.f32 1.442695, %v4127_v39 }
 0x268   :  { %v4090_v43 = vpop.xlane.xlu0 %4089 }
 0x269   :  { %8109 = vpow2.f32 %v4146_v42  ;;  %v4093_v46 = vpop.xlane.xlu1 %4092  ;;  %v4128_v55 = vsub.f32 %v9056_v32, %v4090_v43 }
 0x26a   :  { %v9109_v47 = vpop.eup %8103  ;;  %v4129_v34 = vsub.f32 %v9058_v37, %v4093_v46 }
 0x26b   :  { %v4148_v8 = vmul.f32 1.442695, %v4128_v55  ;;  %v4172_v49 = vsel %vm4075_vm3, %v9109_v47, 0.0 }
 0x26c   :  { %v4150_v24 = vmul.f32 1.442695, %v4129_v34  ;;  %4173 = vadd.xlane.f32.xlu0 %v4172_v49 }
 0x26d   :  { %8111 = vpow2.f32 %v4148_v8 }
 0x26e   :  { %v9114_v41 = vpop.eup %8105  ;;  %8113 = vpow2.f32 %v4150_v24 }
 0x26f   :  { %v4175_v29 = vsel %vm4075_vm3, %v9114_v41, 0.0 }
 0x270   :  { %4176 = vadd.xlane.f32.xlu1 %v4175_v29  ;;  %v4096_v53 = vpop.xlane.xlu0 %4095 }
 0x271   :  { %v4099_v32 = vpop.xlane.xlu1 %4098  ;;  %v4130_v17 = vsub.f32 %v9064_v44, %v4096_v53 }
 0x272   :  { %v9119_v18 = vpop.eup %8107  ;;  %v4131_v37 = vsub.f32 %v9066_v10, %v4099_v32 }
 0x273   :  { %v4152_v60 = vmul.f32 1.442695, %v4130_v17  ;;  %v4178_v61 = vsel %vm4075_vm3, %v9119_v18, 0.0 }
 0x274   :  { %v4154_v0 = vmul.f32 1.442695, %v4131_v37  ;;  %4179 = vadd.xlane.f32.xlu0 %v4178_v61 }
 0x275   :  { %8115 = vpow2.f32 %v4152_v60 }
 0x276   :  { %v9124_v2 = vpop.eup %8109  ;;  %8117 = vpow2.f32 %v4154_v0 }
 0x277   :  { %v4181_v48 = vsel %vm4075_vm3, %v9124_v2, 0.0 }
 0x278   :  { %4182 = vadd.xlane.f32.xlu1 %v4181_v48  ;;  %v4102_v4 = vpop.xlane.xlu0 %4101 }
 0x279   :  { %v4105_v44 = vpop.xlane.xlu1 %4104  ;;  %v4132_v5 = vsub.f32 %v9072_v50, %v4102_v4 }
 0x27a   :  { %v9129_v6 = vpop.eup %8111  ;;  %v4133_v10 = vsub.f32 %v9074_v40, %v4105_v44 }
 0x27b   :  { %v9132_v15 = vpop.eup %8113  ;;  %v4156_v16 = vmul.f32 1.442695, %v4132_v5  ;;  %v4184_v33 = vsel %vm4075_vm3, %v9129_v6, 0.0 }
 0x27c   :  { %v4158_v19 = vmul.f32 1.442695, %v4133_v10  ;;  %v4187_v54 = vsel %vm4075_vm3, %v9132_v15, 0.0  ;;  %4185 = vadd.xlane.f32.xlu0 %v4184_v33 }
 0x27d   :  { %8119 = vpow2.f32 %v4156_v16  ;;  %4188 = vadd.xlane.f32.xlu1 %v4187_v54 }
 0x27e   :  { %8121 = vpow2.f32 %v4158_v19 }
 0x280   :  { %v4108_v20 = vpop.xlane.xlu0 %4107 }
 0x281   :  { %v4111_v50 = vpop.xlane.xlu1 %4110  ;;  %v4134_v21 = vsub.f32 %v9080_v56, %v4108_v20 }
 0x282   :  { %v9139_v22 = vpop.eup %8115  ;;  %v4135_v40 = vsub.f32 %v9082_v59, %v4111_v50 }
 0x283   :  { %v9142_v23 = vpop.eup %8117  ;;  %v4160_v30 = vmul.f32 1.442695, %v4134_v21  ;;  %v4190_v31 = vsel %vm4075_vm3, %v9139_v22, 0.0 }
 0x284   :  { %v4162_v62 = vmul.f32 1.442695, %v4135_v40  ;;  %v4193_v63 = vsel %vm4075_vm3, %v9142_v23, 0.0  ;;  %4191 = vadd.xlane.f32.xlu0 %v4190_v31 }
 0x285   :  { %8123 = vpow2.f32 %v4160_v30  ;;  %4194 = vadd.xlane.f32.xlu1 %v4193_v63 }
 0x286   :  { %8125 = vpow2.f32 %v4162_v62 }
 0x288   :  { %v4114_v38 = vpop.xlane.xlu0 %4113 }
 0x289   :  { %v4117_v56 = vpop.xlane.xlu1 %4116  ;;  %v4136_v39 = vsub.f32 %v9088_v3, %v4114_v38 }
 0x28a   :  { %v9149_v42 = vpop.eup %8119  ;;  %v4137_v59 = vsub.f32 %v9090_v26, %v4117_v56 }
 0x28b   :  { %v9152_v43 = vpop.eup %8121  ;;  %v4164_v46 = vmul.f32 1.442695, %v4136_v39  ;;  %v4196_v55 = vsel %vm4075_vm3, %v9149_v42, 0.0 }
 0x28c   :  { %v4166_v34 = vmul.f32 1.442695, %v4137_v59  ;;  %v4199_v8 = vsel %vm4075_vm3, %v9152_v43, 0.0  ;;  %4197 = vadd.xlane.f32.xlu0 %v4196_v55 }
 0x28d   :  { %8127 = vpow2.f32 %v4164_v46  ;;  %4200 = vadd.xlane.f32.xlu1 %v4199_v8 }
 0x28e   :  { %8129 = vpow2.f32 %v4166_v34 }
 0x290   :  { %v4120_v49 = vpop.xlane.xlu0 %4119 }
 0x291   :  { %v4123_v3 = vpop.xlane.xlu1 %4122  ;;  %v4138_v24 = vsub.f32 %v9096_v11, %v4120_v49 }
 0x292   :  { %v9159_v29 = vpop.eup %8123  ;;  %v4139_v26 = vsub.f32 %v9098_v14, %v4123_v3 }
 0x293   :  { %v9162_v53 = vpop.eup %8125  ;;  %v4168_v32 = vmul.f32 1.442695, %v4138_v24  ;;  %v4202_v17 = vsel %vm4075_vm3, %v9159_v29, 0.0 }
 0x294   :  { %v4170_v37 = vmul.f32 1.442695, %v4139_v26  ;;  %v4205_v60 = vsel %vm4075_vm3, %v9162_v53, 0.0  ;;  %4203 = vadd.xlane.f32.xlu0 %v4202_v17  ;;  %v5438_v17 = vld [vmem:[%s9567_s3 + $0x4] sm:$0x3] }
 0x295   :  { %8131 = vpow2.f32 %v4168_v32  ;;  %4206 = vadd.xlane.f32.xlu1 %v4205_v60 }
 0x296   :  { %8133 = vpow2.f32 %v4170_v37 }
 0x29a   :  { %v9168_v61 = vpop.eup %8127 }
 0x29b   :  { %v9170_v11 = vpop.eup %8129  ;;  %v4208_v14 = vsel %vm4075_vm3, %v9168_v61, 0.0 }
 0x29c   :  { %v4211_v0 = vsel %vm4075_vm3, %v9170_v11, 0.0  ;;  %4209 = vadd.xlane.f32.xlu0 %v4208_v14  ;;  %v5439_v14 = vld [vmem:[%s9567_s3 + $0x6] sm:$0x3] }
 0x29d   :  { %4212 = vadd.xlane.f32.xlu1 %v4211_v0 }
 0x2a2   :  { %v9176_v48 = vpop.eup %8131 }
 0x2a3   :  { %v9178_v4 = vpop.eup %8133  ;;  %v4214_v44 = vsel %vm4075_vm3, %v9176_v48, 0.0 }
 0x2a4   :  { %v4217_v5 = vsel %vm4075_vm3, %v9178_v4, 0.0  ;;  %4215 = vadd.xlane.f32.xlu0 %v4214_v44 }
 0x2a5   :  { %4218 = vadd.xlane.f32.xlu1 %v4217_v5  ;;  %v5440_v5 = vld [vmem:[%s9567_s3 + $0x8] sm:$0x3] }
 0x2f5   :  { %v4174_v10 = vpop.xlane.xlu0 %4173 }
 0x2f6   :  { %8135 = vrcp.f32 %v4174_v10 }
 0x2f9   :  { %v4177_v16 = vpop.xlane.xlu1 %4176 }
 0x2fa   :  { %8137 = vrcp.f32 %v4177_v16 }
 0x2fd   :  { %v4180_v33 = vpop.xlane.xlu0 %4179 }
 0x2fe   :  { %8139 = vrcp.f32 %v4180_v33  ;;  %v5641_v33 = vsel %vm5455_vm4, %v5440_v5, 0 }
 0x301   :  { %v4183_v19 = vpop.xlane.xlu1 %4182 }
 0x302   :  { %8141 = vrcp.f32 %v4183_v19 }
 0x303   :  { %v8136_v54 = vpop.eup %8135 }
 0x304   :  { %v4236_v20 = vmul.f32 %v8136_v54, %v9109_v47  ;;  %v5441_v54 = vld [vmem:[%s9567_s3 + $0xa] sm:$0x3] }
 0x305   :  { %v4186_v50 = vpop.xlane.xlu0 %4185 }
 0x306   :  { %v4189_v21 = vpop.xlane.xlu1 %4188  ;;  %8143 = vrcp.f32 %v4186_v50  ;;  %7784 = vmatmul.mubr.msk.f32.vlgmr.msra.gmra.mxu0 %vm4075_vm3, %v4236_v20 }
 0x307   :  { %v8138_v40 = vpop.eup %8137  ;;  %8145 = vrcp.f32 %v4189_v21  ;;  %7792 = vmatpush3.msra.mxu0 %v9012_v27  ;;  %7793 = vmatprep.mubr.msk.f32.mxu0 %vm8192_vm0, %v8191_v1  ;;  %v5687_v21 = vsel %vm5455_vm4, %v5441_v54, 0  ;;  %v8062_v54 = vld [vmem:[%s9569_s5 + $0x28] ss:$16 sps:$4 sm:$0xff]  }
 0x308   :  { %v4237_v30 = vmul.f32 %v8138_v40, %v9114_v41  ;;  %7801 = vmatprep.subr.mxu0 %v8191_v1 }
 0x30a   :  { %7789 = vmatmul.mubr.msk.f32.vlgmr.msra.gmra.mxu1 %vm4075_vm3, %v4237_v30  ;;  %v5442_v30 = vld [vmem:[%s9567_s3 + $0xc] sm:$0x3] }
 0x30b   :  { %v8140_v31 = vpop.eup %8139  ;;  %7797 = vmatpush3.msra.mxu1 %v9014_v28  ;;  %7798 = vmatprep.mubr.msk.f32.mxu1 %vm8192_vm0, %v8191_v1 }
 0x30c   :  { %v4238_v47 = vmul.f32 %v8140_v31, %v9119_v18  ;;  %7806 = vmatprep.subr.mxu1 %v8191_v1 }
 0x30d   :  { %v4192_v27 = vpop.xlane.xlu0 %4191 }
 0x30e   :  { %v4195_v62 = vpop.xlane.xlu1 %4194  ;;  %8147 = vrcp.f32 %v4192_v27  ;;  %7794 = vmatmul.mubr.msk.f32.vlgmr.msra.gmra.mxu0 %vm4075_vm3, %v4238_v47 }
 0x30f   :  { %v8142_v41 = vpop.eup %8141  ;;  %8149 = vrcp.f32 %v4195_v62  ;;  %7802 = vmatpush3.msra.mxu0 %v9016_v35  ;;  %7803 = vmatprep.mubr.msk.f32.mxu0 %vm8192_vm0, %v8191_v1  ;;  %v5733_v62 = vsel %vm5455_vm4, %v5442_v30, 0  ;;  %v8193_v30 = vmov 0  }
 0x310   :  { %v4239_v28 = vmul.f32 %v8142_v41, %v9124_v2  ;;  %7811 = vmatprep.subr.mxu0 %v8191_v1 }
 0x312   :  { %7799 = vmatmul.mubr.msk.f32.vlgmr.msra.gmra.mxu1 %vm4075_vm3, %v4239_v28  ;;  %v5443_v28 = vld [vmem:[%s9567_s3 + $0xe] sm:$0x3] }
 0x313   :  { %v8144_v18 = vpop.eup %8143  ;;  %7807 = vmatpush3.msra.mxu1 %v9018_v36  ;;  %7808 = vmatprep.mubr.msk.f32.mxu1 %vm8192_vm0, %v8191_v1 }
 0x314   :  { %v8146_v63 = vpop.eup %8145  ;;  %v4240_v38 = vmul.f32 %v8144_v18, %v9129_v6  ;;  %7816 = vmatprep.subr.mxu1 %v8191_v1 }
 0x315   :  { %v4241_v35 = vmul.f32 %v8146_v63, %v9132_v15  ;;  %v4198_v56 = vpop.xlane.xlu0 %4197 }
 0x316   :  { %v4201_v39 = vpop.xlane.xlu1 %4200  ;;  %8151 = vrcp.f32 %v4198_v56  ;;  %7804 = vmatmul.mubr.msk.f32.vlgmr.msra.gmra.mxu0 %vm4075_vm3, %v4240_v38  ;;  %v5779_v38 = vsel %vm5455_vm4, %v5443_v28, 0 }
 0x317   :  { %8153 = vrcp.f32 %v4201_v39  ;;  %7809 = vmatmul.mubr.msk.f32.vlgmr.msra.gmra.mxu1 %vm4075_vm3, %v4241_v35  ;;  %7812 = vmatpush3.msra.mxu0 %v9020_v45  ;;  %v5444_v35 = vld [vmem:[%s9567_s3 + $0x10] sm:$0x3] }
 0x318   :  { %7817 = vmatpush3.msra.mxu1 %v9022_v9  ;;  %7818 = vmatprep.mubr.msk.f32.mxu1 %vm8192_vm0, %v8191_v1 }
 0x319   :  { %7826 = vmatprep.subr.mxu1 %v8191_v1  ;;  %7813 = vmatprep.mubr.msk.f32.mxu0 %vm8192_vm0, %v8191_v1 }
 0x31a   :  { %7821 = vmatprep.subr.mxu0 %v8191_v1 }
 0x31b   :  { %v8148_v36 = vpop.eup %8147 }
 0x31c   :  { %v8150_v2 = vpop.eup %8149  ;;  %v4242_v6 = vmul.f32 %v8148_v36, %v9139_v22 }
 0x31d   :  { %v4243_v15 = vmul.f32 %v8150_v2, %v9142_v23  ;;  %v4204_v59 = vpop.xlane.xlu0 %4203  ;;  %v5825_v2 = vsel %vm5455_vm4, %v5444_v35, 0 }
 0x31e   :  { %v4207_v45 = vpop.xlane.xlu1 %4206  ;;  %8155 = vrcp.f32 %v4204_v59  ;;  %7814 = vmatmul.mubr.msk.f32.vlgmr.msra.gmra.mxu0 %vm4075_vm3, %v4242_v6 }
 0x31f   :  { %8157 = vrcp.f32 %v4207_v45  ;;  %7819 = vmatmul.mubr.msk.f32.vlgmr.msra.gmra.mxu1 %vm4075_vm3, %v4243_v15  ;;  %7822 = vmatpush3.msra.mxu0 %v9024_v51  ;;  %v5445_v15 = vld [vmem:[%s9567_s3 + $0x12] sm:$0x3] }
 0x320   :  { %7827 = vmatpush3.msra.mxu1 %v9026_v52  ;;  %7828 = vmatprep.mubr.msk.f32.mxu1 %vm8192_vm0, %v8191_v1 }
 0x321   :  { %7836 = vmatprep.subr.mxu1 %v8191_v1  ;;  %7823 = vmatprep.mubr.msk.f32.mxu0 %vm8192_vm0, %v8191_v1 }
 0x322   :  { %7831 = vmatprep.subr.mxu0 %v8191_v1 }
 0x323   :  { %v8152_v9 = vpop.eup %8151 }
 0x324   :  { %v8154_v22 = vpop.eup %8153  ;;  %v4244_v23 = vmul.f32 %v8152_v9, %v9149_v42  ;;  %v5871_v9 = vsel %vm5455_vm4, %v5445_v15, 0 }
 0x325   :  { %v4245_v46 = vmul.f32 %v8154_v22, %v9152_v43  ;;  %v4210_v55 = vpop.xlane.xlu0 %4209  ;;  %v5446_v22 = vld [vmem:[%s9567_s3 + $0x14] sm:$0x3] }
 0x326   :  { %v4213_v51 = vpop.xlane.xlu1 %4212  ;;  %8159 = vrcp.f32 %v4210_v55  ;;  %7824 = vmatmul.mubr.msk.f32.vlgmr.msra.gmra.mxu0 %vm4075_vm3, %v4244_v23 }
 0x327   :  { %8161 = vrcp.f32 %v4213_v51  ;;  %7829 = vmatmul.mubr.msk.f32.vlgmr.msra.gmra.mxu1 %vm4075_vm3, %v4245_v46  ;;  %7832 = vmatpush3.msra.mxu0 %v9028_v57  ;;  %v5917_v51 = vsel %vm5455_vm4, %v5446_v22, 0 }
 0x328   :  { %7837 = vmatpush3.msra.mxu1 %v9030_v58  ;;  %7838 = vmatprep.mubr.msk.f32.mxu1 %vm8192_vm0, %v8191_v1 }
 0x329   :  { %7846 = vmatprep.subr.mxu1 %v8191_v1  ;;  %7833 = vmatprep.mubr.msk.f32.mxu0 %vm8192_vm0, %v8191_v1 }
 0x32a   :  { %7841 = vmatprep.subr.mxu0 %v8191_v1 }
 0x32b   :  { %v8156_v52 = vpop.eup %8155 }
 0x32c   :  { %v8158_v42 = vpop.eup %8157  ;;  %v4246_v43 = vmul.f32 %v8156_v52, %v9159_v29 }
 0x32d   :  { %v4247_v34 = vmul.f32 %v8158_v42, %v9162_v53  ;;  %v4216_v8 = vpop.xlane.xlu0 %4215  ;;  %v5437_v53 = vld [vmem:[%s9567_s3 + $0x2] sm:$0x3]  ;;  %v5447_v42 = vld [vmem:[%s9567_s3 + $0x16] sm:$0x3] }
 0x32e   :  { %v4219_v57 = vpop.xlane.xlu1 %4218  ;;  %8163 = vrcp.f32 %v4216_v8  ;;  %7834 = vmatmul.mubr.msk.f32.vlgmr.msra.gmra.mxu0 %vm4075_vm3, %v4246_v43  ;;  %v5503_v32 = vsel %vm5455_vm4, %v5437_v53, 0  ;;  %v5963_v8 = vsel %vm5455_vm4, %v5447_v42, 0 }
 0x32f   :  { %8165 = vrcp.f32 %v4219_v57  ;;  %7839 = vmatmul.mubr.msk.f32.vlgmr.msra.gmra.mxu1 %vm4075_vm3, %v4247_v34  ;;  %7842 = vmatpush3.msra.mxu0 %v9032_v7  ;;  %v5448_v57 = vld [vmem:[%s9567_s3 + $0x18] sm:$0x3] }
 0x330   :  { %7847 = vmatpush3.msra.mxu1 %v9034_v25  ;;  %7843 = vmatprep.mubr.msk.f32.mxu0 %vm8192_vm0, %v8191_v1 }
 0x331   :  { %7848 = vmatprep.mubr.msk.f32.mxu1 %vm8192_vm0, %v8191_v1  ;;  %7851 = vmatprep.subr.mxu0 %v8191_v1 }
 0x332   :  { %7856 = vmatprep.subr.mxu1 %v8191_v1 }
 0x333   :  { %v8160_v58 = vpop.eup %8159 }
 0x334   :  { %v8162_v49 = vpop.eup %8161  ;;  %v4248_v3 = vmul.f32 %v8160_v58, %v9168_v61  ;;  %v5549_v61 = vsel %vm5455_vm4, %v5438_v17, 0 }
 0x335   :  { %v4249_v24 = vmul.f32 %v8162_v49, %v9170_v11 }
 0x336   :  { %7844 = vmatmul.mubr.msk.f32.vlgmr.msra.gmra.mxu0 %vm4075_vm3, %v4248_v3 }
 0x337   :  { %7849 = vmatmul.mubr.msk.f32.vlgmr.msra.gmra.mxu1 %vm4075_vm3, %v4249_v24  ;;  %7852 = vmatpush3.msra.mxu0 %v9036_v12  ;;  %v5436_v12 = vld [vmem:[%s9567_s3] sm:$0x3]  ;;  %v6009_v24 = vsel %vm5455_vm4, %v5448_v57, 0 }
 0x338   :  { %7857 = vmatpush3.msra.mxu1 %v9038_v13  ;;  %7853 = vmatprep.mubr.msk.f32.mxu0 %vm8192_vm0, %v8191_v1  ;;  %v5457_v13 = vsel %vm5455_vm4, %v5436_v12, 0 }
 0x339   :  { %7858 = vmatprep.mubr.msk.f32.mxu1 %vm8192_vm0, %v8191_v1  ;;  %7861 = vmatprep.subr.bf16.mxu0 %v8191_v1 }
 0x33a   :  { %7867 = vmatprep.subr.bf16.mxu1 %v8191_v1 }
 0x33b   :  { %v8164_v7 = vpop.eup %8163 }
 0x33c   :  { %v8166_v25 = vpop.eup %8165  ;;  %v4250_v29 = vmul.f32 %v8164_v7, %v9176_v48 }
 0x33d   :  { %v4251_v26 = vmul.f32 %v8166_v25, %v9178_v4  ;;  %v5595_v4 = vsel %vm5455_vm4, %v5439_v14, 0  ;;  %v5449_v25 = vld [vmem:[%s9567_s3 + $0x1a] sm:$0x3] }
 0x33e   :  { %7854 = vmatmul.mubr.msk.f32.vlgmr.msra.gmra.mxu0 %vm4075_vm3, %v4250_v29  ;;  %v6055_v12 = vsel %vm5455_vm4, %v5449_v25, 0 }
 0x33f   :  { %7859 = vmatmul.mubr.msk.f32.vlgmr.msra.gmra.mxu1 %vm4075_vm3, %v4251_v26  ;;  %7863 = vmatprep.mubr.msk.bf16.mxu0 %vm8192_vm0, %v8191_v1 }
 0x340   :  { %7869 = vmatprep.mubr.msk.bf16.mxu1 %vm8192_vm0, %v8191_v1  ;;  %7862 = vmatpush3.bf16.msra.mxu0 %v5457_v13  ;;  %v5450_v13 = vld [vmem:[%s9567_s3 + $0x1c] sm:$0x3] }
 0x341   :  { %7873 = vmatprep.subr.bf16.mxu0 %v8191_v1  ;;  %7868 = vmatpush3.bf16.msra.mxu1 %v5503_v32 }
 0x342   :  { %7879 = vmatprep.subr.bf16.mxu1 %v8191_v1 }
 0x3c6   :  { %v4321_v37 = vpop.f32.mrf.mxu0 }
 0x3c7   :  { %v5420_v60 = vpack.c.bf16 %v4321_v37, %v4321_v37  ;;  %v6101_v37 = vsel %vm5455_vm4, %v5450_v13, 0 }
 0x3c8   :  { %v7785_v11 = vpop.f32.mrf.mxu0 }
 0x3c9   :  { %7864 = vmatmul.mubr.msk.bf16.vlgmr.msra.gmra.mxu0 %vm2858_vm2, %v5420_v60 }
 0x3ca   :  { %v4394_v0 = vpop.f32.mrf.mxu1  ;;  %7874 = vmatpush3.bf16.msra.mxu0 %v5549_v61  ;;  %7875 = vmatprep.mubr.msk.bf16.mxu0 %vm8192_vm0, %v8191_v1  ;;  %v5451_v61 = vld [vmem:[%s9567_s3 + $0x1e] sm:$0x3] }
 0x3cb   :  { %v5421_v48 = vpack.c.bf16 %v4394_v0, %v4394_v0  ;;  %7885 = vmatprep.subr.bf16.mxu0 %v8191_v1  ;;  %v6147_v0 = vsel %vm5455_vm4, %v5451_v61, 0 }
 0x3cc   :  { %v7790_v44 = vpop.f32.mrf.mxu1 }
 0x3cd   :  { %7870 = vmatmul.mubr.msk.bf16.vlgmr.msra.gmra.mxu1 %vm2858_vm2, %v5421_v48 }
 0x3ce   :  { %v4467_v10 = vpop.f32.mrf.mxu0  ;;  %7880 = vmatpush3.bf16.msra.mxu1 %v5595_v4  ;;  %7881 = vmatprep.mubr.msk.bf16.mxu1 %vm8192_vm0, %v8191_v1 }
 0x3cf   :  { %v5422_v16 = vpack.c.bf16 %v4467_v10, %v4467_v10  ;;  %7891 = vmatprep.subr.bf16.mxu1 %v8191_v1 }
 0x3d0   :  { %v7795_v19 = vpop.f32.mrf.mxu0 }
 0x3d1   :  { %7876 = vmatmul.mubr.msk.bf16.vlgmr.msra.gmra.mxu0 %vm2858_vm2, %v5422_v16  ;;  %v8064_v19 = vld [vmem:[%s9569_s5 + $0x2c] ss:$16 sps:$4 sm:$0xff]  }
 0x3d2   :  { %v4540_v20 = vpop.f32.mrf.mxu1  ;;  %7886 = vmatpush3.bf16.msra.mxu0 %v5641_v33  ;;  %7887 = vmatprep.mubr.msk.bf16.mxu0 %vm8192_vm0, %v8191_v1  ;;  %v8061_v33 = vld [vmem:[%s9569_s5 + $0x24] ss:$16 sps:$4 sm:$0xff]  }
 0x3d3   :  { %v5423_v50 = vpack.c.bf16 %v4540_v20, %v4540_v20  ;;  %7897 = vmatprep.subr.bf16.mxu0 %v8191_v1  ;;  %v8067_v20 = vld [vmem:[%s9569_s5 + $0x4] ss:$16 sps:$4 sm:$0xff]  }
 0x3d4   :  { %v7800_v40 = vpop.f32.mrf.mxu1 }
 0x3d5   :  { %7882 = vmatmul.mubr.msk.bf16.vlgmr.msra.gmra.mxu1 %vm2858_vm2, %v5423_v50  ;;  %v8070_v50 = vld [vmem:[%s9569_s5 + $0xc] ss:$16 sps:$4 sm:$0xff]   ;;  %v8068_v40 = vld [vmem:[%s9569_s5 + $0x8] ss:$16 sps:$4 sm:$0xff]  }
 0x3d6   :  { %v4613_v31 = vpop.f32.mrf.mxu0  ;;  %7892 = vmatpush3.bf16.msra.mxu1 %v5687_v21  ;;  %7893 = vmatprep.mubr.msk.bf16.mxu1 %vm8192_vm0, %v8191_v1  ;;  %v8065_v21 = vld [vmem:[%s9569_s5] ss:$16 sps:$4 sm:$0xff]  }
 0x3d7   :  { %v5424_v47 = vpack.c.bf16 %v4613_v31, %v4613_v31  ;;  %v4686_v27 = vpop.f32.mrf.mxu1  ;;  %7903 = vmatprep.subr.bf16.mxu1 %v8191_v1  ;;  %v8071_v31 = vld [vmem:[%s9571_s7 + $0x78] sm:$0xff]  }
 0x3d8   :  { %v7805_v41 = vpop.f32.mrf.mxu0  ;;  %v5425_v63 = vpack.c.bf16 %v4686_v27, %v4686_v27 }
 0x3d9   :  { %v7810_v18 = vpop.f32.mrf.mxu1  ;;  %7888 = vmatmul.mubr.msk.bf16.vlgmr.msra.gmra.mxu0 %vm2858_vm2, %v5424_v47  ;;  %v8072_v47 = vld [vmem:[%s9571_s7 + $0xf8] sm:$0xff]  }
 0x3da   :  { %7898 = vmatpush3.bf16.msra.mxu0 %v5733_v62  ;;  %7899 = vmatprep.mubr.msk.bf16.mxu0 %vm8192_vm0, %v8191_v1 }
 0x3db   :  { %7909 = vmatprep.subr.bf16.mxu0 %v8191_v1 }
 0x3dd   :  { %7894 = vmatmul.mubr.msk.bf16.vlgmr.msra.gmra.mxu1 %vm2858_vm2, %v5425_v63 }
 0x3de   :  { %v4759_v56 = vpop.f32.mrf.mxu0  ;;  %7904 = vmatpush3.bf16.msra.mxu1 %v5779_v38  ;;  %7905 = vmatprep.mubr.msk.bf16.mxu1 %vm8192_vm0, %v8191_v1 }
 0x3df   :  { %v5426_v39 = vpack.c.bf16 %v4759_v56, %v4759_v56  ;;  %v4832_v36 = vpop.f32.mrf.mxu1  ;;  %7915 = vmatprep.subr.bf16.mxu1 %v8191_v1 }
 0x3e0   :  { %v7815_v6 = vpop.f32.mrf.mxu0  ;;  %v5427_v45 = vpack.c.bf16 %v4832_v36, %v4832_v36 }
 0x3e1   :  { %v7820_v59 = vpop.f32.mrf.mxu1  ;;  %7900 = vmatmul.mubr.msk.bf16.vlgmr.msra.gmra.mxu0 %vm2858_vm2, %v5426_v39 }
 0x3e2   :  { %7910 = vmatpush3.bf16.msra.mxu0 %v5825_v2  ;;  %7911 = vmatprep.mubr.msk.bf16.mxu0 %vm8192_vm0, %v8191_v1 }
 0x3e3   :  { %7921 = vmatprep.subr.bf16.mxu0 %v8191_v1 }
 0x3e5   :  { %7906 = vmatmul.mubr.msk.bf16.vlgmr.msra.gmra.mxu1 %vm2858_vm2, %v5427_v45 }
 0x3e6   :  { %v4905_v23 = vpop.f32.mrf.mxu0  ;;  %7916 = vmatpush3.bf16.msra.mxu1 %v5871_v9  ;;  %7917 = vmatprep.mubr.msk.bf16.mxu1 %vm8192_vm0, %v8191_v1 }
 0x3e7   :  { %v5428_v46 = vpack.c.bf16 %v4905_v23, %v4905_v23  ;;  %v4978_v55 = vpop.f32.mrf.mxu1  ;;  %7927 = vmatprep.subr.bf16.mxu1 %v8191_v1 }
 0x3e8   :  { %v7825_v52 = vpop.f32.mrf.mxu0  ;;  %v5429_v34 = vpack.c.bf16 %v4978_v55, %v4978_v55 }
 0x3e9   :  { %v7830_v43 = vpop.f32.mrf.mxu1  ;;  %7912 = vmatmul.mubr.msk.bf16.vlgmr.msra.gmra.mxu0 %vm2858_vm2, %v5428_v46 }
 0x3ea   :  { %7922 = vmatpush3.bf16.msra.mxu0 %v5917_v51  ;;  %7923 = vmatprep.mubr.msk.bf16.mxu0 %vm8192_vm0, %v8191_v1 }
 0x3eb   :  { %7933 = vmatprep.subr.bf16.mxu0 %v8191_v1 }
 0x3ed   :  { %7918 = vmatmul.mubr.msk.bf16.vlgmr.msra.gmra.mxu1 %vm2858_vm2, %v5429_v34 }
 0x3ee   :  { %v5051_v58 = vpop.f32.mrf.mxu0  ;;  %7928 = vmatpush3.bf16.msra.mxu1 %v5963_v8  ;;  %7929 = vmatprep.mubr.msk.bf16.mxu1 %vm8192_vm0, %v8191_v1 }
 0x3ef   :  { %v5430_v49 = vpack.c.bf16 %v5051_v58, %v5051_v58  ;;  %v5124_v3 = vpop.f32.mrf.mxu1  ;;  %7939 = vmatprep.subr.bf16.mxu1 %v8191_v1 }
 0x3f0   :  { %v7835_v7 = vpop.f32.mrf.mxu0  ;;  %v5431_v26 = vpack.c.bf16 %v5124_v3, %v5124_v3 }
 0x3f1   :  { %v7840_v29 = vpop.f32.mrf.mxu1  ;;  %7924 = vmatmul.mubr.msk.bf16.vlgmr.msra.gmra.mxu0 %vm2858_vm2, %v5430_v49 }
 0x3f2   :  { %7934 = vmatpush3.bf16.msra.mxu0 %v6009_v24  ;;  %7935 = vmatprep.mubr.msk.bf16.mxu0 %vm8192_vm0, %v8191_v1 }
 0x3f3   :  { %7945 = vmatprep.subr.bf16.mxu0 %v8191_v1 }
 0x3f5   :  { %7930 = vmatmul.mubr.msk.bf16.vlgmr.msra.gmra.mxu1 %vm2858_vm2, %v5431_v26 }
 0x3f6   :  { %v5197_v53 = vpop.f32.mrf.mxu0  ;;  %7940 = vmatpush3.bf16.msra.mxu1 %v6055_v12  ;;  %7941 = vmatprep.mubr.msk.bf16.mxu1 %vm8192_vm0, %v8191_v1 }
 0x3f7   :  { %v5432_v32 = vpack.c.bf16 %v5197_v53, %v5197_v53  ;;  %v5270_v17 = vpop.f32.mrf.mxu1  ;;  %7951 = vmatprep.subr.bf16.mxu1 %v8191_v1 }
 0x3f8   :  { %v7845_v60 = vpop.f32.mrf.mxu0  ;;  %v5433_v14 = vpack.c.bf16 %v5270_v17, %v5270_v17 }
 0x3f9   :  { %v7850_v11 = vpop.f32.mrf.mxu1  ;;  %7936 = vmatmul.mubr.msk.bf16.vlgmr.msra.gmra.mxu0 %vm2858_vm2, %v5432_v32 }
 0x3fa   :  { %7946 = vmatpush3.bf16.msra.mxu0 %v6101_v37  ;;  %7947 = vmatprep.mubr.msk.bf16.mxu0 %vm8192_vm0, %v8191_v1 }
 0x3fb   :  { %6314 = vmatprep.subr.bf16.mxu0 %v8061_v33 }
 0x3fd   :  { %7942 = vmatmul.mubr.msk.bf16.vlgmr.msra.gmra.mxu1 %vm2858_vm2, %v5433_v14 }
 0x3fe   :  { %v5343_v48 = vpop.f32.mrf.mxu0  ;;  %7952 = vmatpush3.bf16.msra.mxu1 %v6147_v0  ;;  %7953 = vmatprep.mubr.msk.bf16.mxu1 %vm8192_vm0, %v8191_v1  ;;  %v8059_v1 = vld [vmem:[%s9569_s5 + $0x20] ss:$16 sps:$4 sm:$0xff]  }
 0x3ff   :  { %v5434_v4 = vpack.c.bf16 %v5343_v48, %v5343_v48  ;;  %v5416_v44 = vpop.f32.mrf.mxu1  ;;  %6357 = vmatprep.subr.bf16.mxu1 %v8064_v19 }
 0x400   :  { %v7855_v5 = vpop.f32.mrf.mxu0  ;;  %v5435_v16 = vpack.c.bf16 %v5416_v44, %v5416_v44 }
 0x401   :  { %v7860_v10 = vpop.f32.mrf.mxu1  ;;  %7948 = vmatmul.mubr.msk.bf16.vlgmr.msra.gmra.mxu0 %vm2858_vm2, %v5434_v4 }
 0x402   :  { %6315 = vmatpush1.bf16.msra.mxu0 %v8059_v1  ;;  %6334 = vmatprep.mubr.bf16.mxu0 %v8193_v30 }
 0x403   :  { %6316 = vmatprep.subr.bf16.mxu0 %v8067_v20 }
 0x405   :  { %7954 = vmatmul.mubr.msk.bf16.vlgmr.msra.gmra.mxu1 %vm2858_vm2, %v5435_v16 }
 0x406   :  { %6358 = vmatpush1.bf16.msra.mxu1 %v8062_v54  ;;  %6317 = vmatpush1.bf16.msra.mxu0 %v8065_v21 }
 0x407   :  { %6359 = vmatprep.subr.bf16.mxu1 %v8070_v50  ;;  %6377 = vmatprep.mubr.bf16.mxu1 %v8193_v30 }
 0x408   :  { %7273 = vmatprep.subr.bf16.mxu0 %v8071_v31 }
 0x40a   :  { %6360 = vmatpush1.bf16.msra.mxu1 %v8068_v40 }
 0x40b   :  { %7295 = vmatprep.subr.bf16.mxu1 %v8072_v47 }
 0x489   :  { %v5493_v27 = vpop.f32.mrf.mxu0 }
 0x48a   :  { %v6189_v14 = vsel %vm239_vm1, %v5493_v27, 0.0 }
 0x48b   :  { %v7865_v62 = vpop.f32.mrf.mxu0 }
 0x48d   :  { %v5496_v41 = vpop.f32.mrf.mxu0  ;;  %v5539_v28 = vpop.f32.mrf.mxu1 }
 0x48e   :  { %v6204_v1 = vsel %vm239_vm1, %v5539_v28, 0.0 }
 0x48f   :  { %v7866_v18 = vpop.f32.mrf.mxu0  ;;  %v7871_v63 = vpop.f32.mrf.mxu1 }
 0x491   :  { %v5542_v38 = vpop.f32.mrf.mxu1  ;;  %v5585_v35 = vpop.f32.mrf.mxu0 }
 0x492   :  { %v6190_v60 = vsel %vm239_vm1, %v5585_v35, 0.0 }
 0x493   :  { %v7872_v56 = vpop.f32.mrf.mxu1  ;;  %v7877_v39 = vpop.f32.mrf.mxu0  ;;  %v6191_v48 = vadd.f32 %v6190_v60, %v6189_v14  ;;  %v8077_v60 = vld [vmem:[%s9571_s7 + $0x30] sm:$0xff]   ;;  %v8080_v14 = vld [vmem:[%s9571_s7 + $0xe8] sm:$0xff]  }
 0x495   :  { %v5588_v36 = vpop.f32.mrf.mxu0  ;;  %v5631_v2 = vpop.f32.mrf.mxu1 }
 0x496   :  { %v6205_v5 = vsel %vm239_vm1, %v5631_v2, 0.0 }
 0x497   :  { %v7878_v6 = vpop.f32.mrf.mxu0  ;;  %v7883_v15 = vpop.f32.mrf.mxu1  ;;  %v6206_v50 = vadd.f32 %v6205_v5, %v6204_v1  ;;  %v8085_v5 = vld [vmem:[%s9571_s7 + $0x20] sm:$0xff]   ;;  %v8090_v1 = vld [vmem:[%s9571_s7 + $0x98] sm:$0xff]  }
 0x499   :  { %v5634_v59 = vpop.f32.mrf.mxu1  ;;  %v5677_v45 = vpop.f32.mrf.mxu0 }
 0x49a   :  { %v6192_v0 = vsel %vm239_vm1, %v5677_v45, 0.0 }
 0x49b   :  { %v7884_v9 = vpop.f32.mrf.mxu1  ;;  %v7889_v22 = vpop.f32.mrf.mxu0  ;;  %v6193_v16 = vadd.f32 %v6192_v0, %v6191_v48  ;;  %v8081_v0 = vld [vmem:[%s9571_s7 + $0x28] sm:$0xff]  }
 0x49c   :  { %v8082_v48 = vld [vmem:[%s9571_s7 + $0xa8] sm:$0xff]  }
 0x49d   :  { %v5680_v23 = vpop.f32.mrf.mxu0  ;;  %v5723_v46 = vpop.f32.mrf.mxu1 }
 0x49e   :  { %v6207_v54 = vsel %vm239_vm1, %v5723_v46, 0.0 }
 0x49f   :  { %v7890_v55 = vpop.f32.mrf.mxu0  ;;  %v7895_v51 = vpop.f32.mrf.mxu1  ;;  %v6208_v27 = vadd.f32 %v6207_v54, %v6206_v50  ;;  %v8091_v54 = vld [vmem:[%s9571_s7 + $0x50] sm:$0xff]  }
 0x4a0   :  { %v8093_v50 = vld [vmem:[%s9571_s7 + $0x10] sm:$0xff]  }
 0x4a1   :  { %v5726_v52 = vpop.f32.mrf.mxu1  ;;  %v5769_v42 = vpop.f32.mrf.mxu0 }
 0x4a2   :  { %v6194_v10 = vsel %vm239_vm1, %v5769_v42, 0.0 }
 0x4a3   :  { %v7896_v43 = vpop.f32.mrf.mxu1  ;;  %v7901_v34 = vpop.f32.mrf.mxu0  ;;  %v6195_v21 = vadd.f32 %v6194_v10, %v6193_v16  ;;  %v8086_v10 = vld [vmem:[%s9571_s7 + $0xa0] sm:$0xff]   ;;  %v8087_v16 = vld [vmem:[%s9571_s7 + $0x58] sm:$0xff]  }
 0x4a4   :  { %v8167_v34 = vld [vmem:[%s9564_s0] sm:$0xff] }
 0x4a5   :  { %v5772_v8 = vpop.f32.mrf.mxu0  ;;  %v5815_v57 = vpop.f32.mrf.mxu1 }
 0x4a6   :  { %v6209_v31 = vsel %vm239_vm1, %v5815_v57, 0.0 }
 0x4a7   :  { %v7902_v58 = vpop.f32.mrf.mxu0  ;;  %v7907_v49 = vpop.f32.mrf.mxu1  ;;  %v6210_v38 = vadd.f32 %v6209_v31, %v6208_v27  ;;  %v8097_v31 = vld [vmem:[%s9571_s7 + $0x8] sm:$0xff]   ;;  %v8099_v27 = vld [vmem:[%s9571_s7 + $0x40] sm:$0xff]  }
 0x4a9   :  { %v5818_v3 = vpop.f32.mrf.mxu1  ;;  %v5861_v24 = vpop.f32.mrf.mxu0 }
 0x4aa   :  { %v6196_v20 = vsel %vm239_vm1, %v5861_v24, 0.0  ;;  %v6989_v3 = vld [vmem:[%s9568_s4] ss:$0 sm:$0xff]  ;;  %v8168_v24 = vld [vmem:[%s9564_s0 + $0x8] sm:$0xff] }
 0x4ab   :  { %v7908_v7 = vpop.f32.mrf.mxu1  ;;  %v7913_v25 = vpop.f32.mrf.mxu0  ;;  %v6197_v62 = vadd.f32 %v6196_v20, %v6195_v21  ;;  %v8092_v20 = vld [vmem:[%s9571_s7 + $0xd0] sm:$0xff]  }
 0x4ac   :  { %v8094_v21 = vld [vmem:[%s9571_s7 + $0x90] sm:$0xff]  }
 0x4ad   :  { %v5864_v29 = vpop.f32.mrf.mxu0  ;;  %v5907_v26 = vpop.f32.mrf.mxu1 }
 0x4ae   :  { %v6211_v63 = vsel %vm239_vm1, %v5907_v26, 0.0 }
 0x4af   :  { %v7914_v12 = vpop.f32.mrf.mxu0  ;;  %v7919_v13 = vpop.f32.mrf.mxu1  ;;  %v6212_v2 = vadd.f32 %v6211_v63, %v6210_v38  ;;  %v6239_v63 = vlaneseq }
 0x4b0   :  { %v8073_v13 = vld [vmem:[%s9571_s7 + $0x38] sm:$0xff]  }
 0x4b1   :  { %v5910_v53 = vpop.f32.mrf.mxu1  ;;  %v5953_v32 = vpop.f32.mrf.mxu0 }
 0x4b2   :  { %v6198_v47 = vsel %vm239_vm1, %v5953_v32, 0.0  ;;  %v8074_v53 = vld [vmem:[%s9571_s7 + $0xb8] sm:$0xff]  }
 0x4b3   :  { %v7920_v17 = vpop.f32.mrf.mxu1  ;;  %v7925_v37 = vpop.f32.mrf.mxu0  ;;  %v6199_v35 = vadd.f32 %v6198_v47, %v6197_v62  ;;  %v8098_v47 = vld [vmem:[%s9571_s7 + $0x88] sm:$0xff]   ;;  %v8100_v62 = vld [vmem:[%s9571_s7 + $0xc0] sm:$0xff]  }
 0x4b4   :  { %v8075_v17 = vld [vmem:[%s9571_s7 + $0x70] sm:$0xff]  }
 0x4b5   :  { %v5956_v61 = vpop.f32.mrf.mxu0  ;;  %v5999_v11 = vpop.f32.mrf.mxu1  ;;  %v8076_v37 = vld [vmem:[%s9571_s7 + $0xf0] sm:$0xff]  }
 0x4b6   :  { %v6213_v36 = vsel %vm239_vm1, %v5999_v11, 0.0  ;;  %v8078_v61 = vld [vmem:[%s9571_s7 + $0xb0] sm:$0xff]   ;;  %v8079_v11 = vld [vmem:[%s9571_s7 + $0x68] sm:$0xff]  }
 0x4b7   :  { %v7926_v4 = vpop.f32.mrf.mxu0  ;;  %v7931_v44 = vpop.f32.mrf.mxu1  ;;  %v6214_v22 = vadd.f32 %v6213_v36, %v6212_v2  ;;  %v6237_v36 = vld [vmem:[%s9570_s6] sm:$0xf] }
 0x4b8   :  { %v8083_v4 = vld [vmem:[%s9571_s7 + $0x60] sm:$0xff]  }
 0x4b9   :  { %v6002_v33 = vpop.f32.mrf.mxu1  ;;  %v6045_v19 = vpop.f32.mrf.mxu0  ;;  %v8084_v44 = vld [vmem:[%s9571_s7 + $0xe0] sm:$0xff]  }
 0x4ba   :  { %v6200_v28 = vsel %vm239_vm1, %v6045_v19, 0.0  ;;  %v8088_v33 = vld [vmem:[%s9571_s7 + $0xd8] sm:$0xff]  }
 0x4bb   :  { %v7932_v40 = vpop.f32.mrf.mxu1  ;;  %v7937_v30 = vpop.f32.mrf.mxu0  ;;  %v6201_v6 = vadd.f32 %v6200_v28, %v6199_v35  ;;  %v8089_v19 = vld [vmem:[%s9571_s7 + $0x18] sm:$0xff]   ;;  %v6240_v28 = vshrl.u32 %v6239_v63, 7 }
 0x4bc   :  { %v8095_v40 = vld [vmem:[%s9571_s7 + $0x48] sm:$0xff]  }
 0x4bd   :  { %v6048_v41 = vpop.f32.mrf.mxu0  ;;  %v6091_v18 = vpop.f32.mrf.mxu1  ;;  %v8096_v30 = vld [vmem:[%s9571_s7 + $0xc8] sm:$0xff]   ;;  %v6245_v38 = vsub.s32 1, %v6240_v28  ;;  %v6253_v35 = vsub.s32 3, %v6240_v28 }
 0x4be   :  { %v6215_v45 = vsel %vm239_vm1, %v6091_v18, 0.0  ;;  %v8101_v41 = vld [vmem:[%s9571_s7] sm:$0xff]  }
 0x4bf   :  { %v7938_v56 = vpop.f32.mrf.mxu0  ;;  %v7943_v39 = vpop.f32.mrf.mxu1  ;;  %v6216_v51 = vadd.f32 %v6215_v45, %v6214_v22  ;;  %v8102_v18 = vld [vmem:[%s9571_s7 + $0x80] sm:$0xff]  }
 0x4c0   :  { %v6241_v56 = vsub.s32 0, %v6240_v28  ;;  %v6249_v39 = vsub.s32 2, %v6240_v28 }
 0x4c1   :  { %v6094_v15 = vpop.f32.mrf.mxu1  ;;  %v6137_v59 = vpop.f32.mrf.mxu0 }
 0x4c2   :  { %v6202_v9 = vsel %vm239_vm1, %v6137_v59, 0.0  ;;  %v6246_v15 = vrot.slane %v6237_v36, %v6245_v38  ;;  %v6254_v59 = vrot.slane %v6237_v36, %v6253_v35  ;;  %v6242_v45 = vrot.slane %v6237_v36, %v6241_v56 }
 0x4c3   :  { %v6203_v23 = vadd.f32 %v6202_v9, %v6201_v6  ;;  %v7944_v46 = vpop.f32.mrf.mxu1  ;;  %v7949_v55 = vpop.f32.mrf.mxu0  ;;  %v6250_v9 = vrot.slane %v6237_v36, %v6249_v39 }
 0x4c5   :  { %v6140_v52 = vpop.f32.mrf.mxu0  ;;  %v6183_v42 = vpop.f32.mrf.mxu1  ;;  %v6219_v8 = vadd.f32 %v8167_v34, %v6203_v23 }
 0x4c6   :  { %v6217_v43 = vsel %vm239_vm1, %v6183_v42, 0.0 }
 0x4c7   :  { %v6218_v57 = vadd.f32 %v6217_v43, %v6216_v51  ;;  %v7950_v58 = vpop.f32.mrf.mxu0  ;;  %v7955_v49 = vpop.f32.mrf.mxu1  ;;  %v9453_v29 = vadd.f32 %v6989_v3, %v6219_v8 }
 0x4c9   :  { %v6220_v7 = vadd.f32 %v8168_v24, %v6218_v57  ;;  %v6186_v25 = vpop.f32.mrf.mxu1 }
 0x4cb   :  { %v9455_v26 = vadd.f32 %v6989_v3, %v6220_v7  ;;  %v7956_v12 = vpop.f32.mrf.mxu1 }
 0x4cd   :  { %v6228_v32 = vpack.c.bf16 %v9455_v26, %v9453_v29 }
 0x4cf   :  { %6998 = vmatmul.mubr.msk.bf16.vlgmr.msra.gmra.mxu0 %vm239_vm1, %v6228_v32  ;;  %6999 = vmatmul.mubr.msk.bf16.vlgmr.msra.gmra.mxu1 %vm239_vm1, %v6228_v32 }
 0x4d0   :  { %7274 = vmatpush3.bf16.msra.mxu0 %v8073_v13  ;;  %7296 = vmatpush3.bf16.msra.mxu1 %v8074_v53 }
 0x4d1   :  { %7275 = vmatprep.subr.bf16.mxu0 %v8075_v17  ;;  %7297 = vmatprep.subr.bf16.mxu1 %v8076_v37 }
 0x4d4   :  { %7276 = vmatpush3.bf16.msra.mxu0 %v8077_v60  ;;  %7298 = vmatpush3.bf16.msra.mxu1 %v8078_v61 }
 0x4d5   :  { %7277 = vmatprep.subr.bf16.mxu0 %v8079_v11  ;;  %7299 = vmatprep.subr.bf16.mxu1 %v8080_v14 }
 0x4d8   :  { %7278 = vmatpush3.bf16.msra.mxu0 %v8081_v0  ;;  %7300 = vmatpush3.bf16.msra.mxu1 %v8082_v48 }
 0x4d9   :  { %7279 = vmatprep.subr.bf16.mxu0 %v8083_v4  ;;  %7301 = vmatprep.subr.bf16.mxu1 %v8084_v44 }
 0x4dc   :  { %7280 = vmatpush3.bf16.msra.mxu0 %v8085_v5  ;;  %7302 = vmatpush3.bf16.msra.mxu1 %v8086_v10 }
 0x4dd   :  { %7281 = vmatprep.subr.bf16.mxu0 %v8087_v16  ;;  %7303 = vmatprep.subr.bf16.mxu1 %v8088_v33 }
 0x4e0   :  { %7282 = vmatpush3.bf16.msra.mxu0 %v8089_v19  ;;  %7304 = vmatpush3.bf16.msra.mxu1 %v8090_v1  ;;  %v7032_v19 = vld [vmem:[%s9568_s4 + $0x1] ss:$0 sm:$0xff] }
 0x4e1   :  { %7283 = vmatprep.subr.bf16.mxu0 %v8091_v54  ;;  %7305 = vmatprep.subr.bf16.mxu1 %v8092_v20 }
 0x4e4   :  { %7284 = vmatpush3.bf16.msra.mxu0 %v8093_v50  ;;  %7306 = vmatpush3.bf16.msra.mxu1 %v8094_v21 }
 0x4e5   :  { %7285 = vmatprep.subr.bf16.mxu0 %v8095_v40  ;;  %7307 = vmatprep.subr.bf16.mxu1 %v8096_v30 }
 0x4e8   :  { %7286 = vmatpush3.bf16.msra.mxu0 %v8097_v31  ;;  %7308 = vmatpush3.bf16.msra.mxu1 %v8098_v47 }
 0x4e9   :  { %7287 = vmatprep.subr.bf16.mxu0 %v8099_v27  ;;  %7309 = vmatprep.subr.bf16.mxu1 %v8100_v62 }
 0x4ec   :  { %7288 = vmatpush3.bf16.msra.mxu0 %v8101_v41  ;;  %7310 = vmatpush3.bf16.msra.mxu1 %v8102_v18 }
 0x58f   :  { %v6336_v2 = vpop.f32.mrf.mxu0  ;;  %v6379_v6 = vpop.f32.mrf.mxu1 }
 0x590   :  { %v6337_v34 = vadd.f32 %v6336_v2, %v6242_v45  ;;  %v6380_v8 = vadd.f32 %v6379_v6, %v6250_v9 }
 0x591   :  { %v6338_v22 = vpop.f32.mrf.mxu0  ;;  %v6381_v23 = vpop.f32.mrf.mxu1 }
 0x592   :  { %v6339_v51 = vadd.f32 %v6338_v22, %v6246_v15  ;;  %v6382_v52 = vadd.f32 %v6381_v23, %v6254_v59  ;;  %v6388_v32 = vmax.f32 %v6337_v34, 0.0  ;;  %v6390_v17 = vmax.f32 %v6380_v8, 0.0 }
 0x593   :  { %v6340_v46 = vpop.f32.mrf.mxu0  ;;  %v6383_v55 = vpop.f32.mrf.mxu1 }
 0x594   :  { %v6341_v42 = vadd.f32 %v6340_v46, %v6242_v45  ;;  %v6384_v43 = vadd.f32 %v6383_v55, %v6250_v9  ;;  %v6389_v25 = vmax.f32 %v6339_v51, 0.0  ;;  %v6391_v12 = vmax.f32 %v6382_v52, 0.0 }
 0x595   :  { %v6342_v57 = vpop.f32.mrf.mxu0  ;;  %v6385_v58 = vpop.f32.mrf.mxu1 }
 0x596   :  { %v6343_v49 = vadd.f32 %v6342_v57, %v6246_v15  ;;  %v6386_v3 = vadd.f32 %v6385_v58, %v6254_v59  ;;  %v6392_v24 = vmax.f32 %v6341_v42, 0.0  ;;  %v6394_v7 = vmax.f32 %v6384_v43, 0.0 }
 0x598   :  { %v6393_v13 = vmax.f32 %v6343_v49, 0.0  ;;  %v6395_v53 = vmax.f32 %v6386_v3, 0.0  ;;  %v6396_v61 = vpack.c.bf16 %v6392_v24, %v6388_v32  ;;  %v6398_v11 = vpack.c.bf16 %v6394_v7, %v6390_v17 }
 0x59a   :  { %v6397_v37 = vpack.c.bf16 %v6393_v13, %v6389_v25  ;;  %v6399_v60 = vpack.c.bf16 %v6395_v53, %v6391_v12 }
 0x59c   :  { %6688 = vmatprep.mubr.bf16.mxu0 %v6397_v37  ;;  %6729 = vmatprep.mubr.bf16.mxu1 %v6399_v60 }
 0x59d   :  { %6689 = vmatmul.mubr.bf16.vlgmr.msra.gmra.mxu0 %v6396_v61  ;;  %6730 = vmatmul.mubr.bf16.vlgmr.msra.gmra.mxu1 %v6398_v11 }
 0x65d   :  { %v7289_v14 = vpop.f32.mrf.mxu0  ;;  %v7311_v0 = vpop.f32.mrf.mxu1 }
 0x65f   :  { %v7290_v48 = vpop.f32.mrf.mxu0  ;;  %v7312_v4 = vpop.f32.mrf.mxu1 }
 0x660   :  { %v7291_v44 = vadd.f32 %v7290_v48, %v7289_v14  ;;  %v7313_v5 = vadd.f32 %v7312_v4, %v7311_v0 }
 0x661   :  { %v7292_v10 = vpop.f32.mrf.mxu0  ;;  %v7314_v16 = vpop.f32.mrf.mxu1 }
 0x662   :  { %v6732_v33 = vadd.f32 %v7313_v5, %v7291_v44 }
 0x663   :  { %v7293_v1 = vpop.f32.mrf.mxu0  ;;  %v7315_v54 = vpop.f32.mrf.mxu1 }
 0x664   :  { %v6738_v20 = vadd.f32 %v6732_v33, %v9453_v29  ;;  %v7294_v50 = vadd.f32 %v7293_v1, %v7292_v10  ;;  %v7316_v21 = vadd.f32 %v7315_v54, %v7314_v16 }
 0x666   :  { %v6745_v40 = vadd.f32 %v7032_v19, %v6738_v20  ;;  %v6735_v30 = vadd.f32 %v7316_v21, %v7294_v50 }
 0x668   :  { %6747 = vst.msk [vmem:[#allocation2] sm:$0xff] %vm239_vm1, %v6745_v40  ;;  %v6739_v31 = vadd.f32 %v6735_v30, %v9455_v26 }
 0x66a   :  { %v6746_v47 = vadd.f32 %v7032_v19, %v6739_v31 }
 0x66c   :  { %6748 = vst.msk [vmem:[#allocation2 + $0x8] sm:$0xff] %vm239_vm1, %v6746_v47 }
 0x66d   :  { %8180 = shalt.err (!%p8177_p4)
}
 0x66e   :  { %s8195_s4 = smov 128   ;;  %s8196_s26 = smov 8  }
 0x66f   :  { %6760 = dma.vmem_to_hbm [thread:$0]  %s6755_s1, 256, %s9572_s8, [#allocation3], %s8195_s4, %s8195_s4, %s8196_s26  }
 0x670   :  { %8189 = dma.done.wait [#allocation3], 256  }
 0x671   :  { %8190 = vsyncadd [#allocation3], 4294967040 }
 0x672   :  { %6764 = vsyncpa [#allocation3], 1 }

</bundles_post_ra>
